<compile_context>
chip_gen: v7x
topology: tpu7x:2x2x1
jax: 0.10.0
libtpu: 0.0.40
codegen_flags: <defaults>
</compile_context>

<pallas_src>
import functools

import jax
import jax.numpy as jnp
from jax.experimental import pallas as pl
from jax.experimental.pallas import tpu as pltpu

VMEM_SPEC = pl.BlockSpec(memory_space=pltpu.MemorySpace.VMEM)
_BN_EPS = 1e-5
_K = 5  # Conv1d kernel_size for every layer


# ---------------------------------------------------------------------------
# Fused forward kernel (all layers, one invocation)
# ---------------------------------------------------------------------------
def _convnet_kernel(
    x_ref,
    w1_ref, b1_ref, w2_ref, b2_ref, g1_ref, be1_ref,
    w3_ref, b3_ref, w4_ref, b4_ref, g2_ref, be2_ref,
    w5_ref, b5_ref, w6_ref, b6_ref, g3_ref, be3_ref,
    wl_ref, bl_ref,
    o_ref,
    *, K, eps):

    def conv_same(x, w, b):
        # x: (N, L, Cin), w: (K*Cin, Cout), b: (1, Cout). padding='same', stride 1.
        N, L, Cin = x.shape
        Cout = w.shape[1]
        pad = (K - 1) // 2                    # K is odd (5) -> symmetric padding
        z = jnp.zeros((N, pad, Cin), jnp.float32)
        xp = jnp.concatenate([z, x, z], axis=1)                 # (N, L+K-1, Cin)
        # im2col: K shifted views concatenated along the channel (lane) axis.
        cols = jnp.concatenate([xp[:, k:k + L, :] for k in range(K)], axis=-1)
        y = jnp.dot(cols.reshape(N * L, K * Cin), w,            # single MXU matmul
                    preferred_element_type=jnp.float32) + b
        return y.reshape(N, L, Cout)

    def bn_relu(x, g, be):
        # Training-mode BatchNorm1d: batch mean / biased variance over (N, L).
        mean = jnp.mean(x, axis=(0, 1), keepdims=True)          # (1, 1, C)
        var = jnp.mean(jnp.square(x - mean), axis=(0, 1), keepdims=True)
        y = (x - mean) * jax.lax.rsqrt(var + eps) * g + be
        return jnp.maximum(y, 0.0)

    def maxpool2(x):
        N, L, C = x.shape
        return jnp.max(x.reshape(N, L // 2, 2, C), axis=2)      # (N, L//2, C)

    x = x_ref[...]                                              # (N, L, 12)

    # Block 1
    x = conv_same(x, w1_ref[...], b1_ref[...])                  # (N, L, 32)
    x = conv_same(x, w2_ref[...], b2_ref[...])                  # (N, L, 64)
    x = bn_relu(x, g1_ref[...], be1_ref[...])
    x = maxpool2(x)                                             # (N, L/2, 64)

    # Block 2
    x = conv_same(x, w3_ref[...], b3_ref[...])                  # (N, L/2, 32)
    x = conv_same(x, w4_ref[...], b4_ref[...])                  # (N, L/2, 32)
    x = bn_relu(x, g2_ref[...], be2_ref[...])
    x = maxpool2(x)                                             # (N, L/4, 32)

    # Block 3
    x = conv_same(x, w5_ref[...], b5_ref[...])                  # (N, L/4, 32)
    x = conv_same(x, w6_ref[...], b6_ref[...])                  # (N, L/4, 32)
    x = bn_relu(x, g3_ref[...], be3_ref[...])

    # AdaptiveAvgPool1d(1) + Flatten + Linear(32 -> 1)
    pooled = jnp.mean(x, axis=1)                                # (N, 32)
    o_ref[...] = jnp.dot(pooled, wl_ref[...],
                         preferred_element_type=jnp.float32) + bl_ref[...]


# ---------------------------------------------------------------------------
# Wrapper: one pallas_call for the whole network
# ---------------------------------------------------------------------------
def standard_convnet_forward(x_ncl, params):
    """x_ncl: (N, 12, L) PyTorch-layout input.  L must be divisible by 4."""
    x = jnp.transpose(x_ncl, (0, 2, 1)).astype(jnp.float32)     # (N, L, 12)
    N = x.shape[0]

    def flat(w):   # (K, Cin, Cout) -> (K*Cin, Cout) for the in-kernel im2col dot
        k, cin, cout = w.shape
        return w.reshape(k * cin, cout)

    args = (
        x,
        flat(params['w1']), params['b1'],
        flat(params['w2']), params['b2'],
        params['g1'], params['be1'],
        flat(params['w3']), params['b3'],
        flat(params['w4']), params['b4'],
        params['g2'], params['be2'],
        flat(params['w5']), params['b5'],
        flat(params['w6']), params['b6'],
        params['g3'], params['be3'],
        params['wl'], params['bl'],
    )

    kern = functools.partial(_convnet_kernel, K=_K, eps=_BN_EPS)
    return pl.pallas_call(
        kern,
        out_shape=jax.ShapeDtypeStruct((N, 1), jnp.float32),
        in_specs=[VMEM_SPEC] * len(args),
        out_specs=VMEM_SPEC,
    )(*args)


# ---------------------------------------------------------------------------
# Parameters (deterministic synthetic init)
# ---------------------------------------------------------------------------
def init_params(key):
    def conv_p(k, cin, cout, ksize=_K, scale=0.1):
        kw, kb = jax.random.split(k)
        return (scale * jax.random.normal(kw, (ksize, cin, cout), jnp.float32),
                scale * jax.random.normal(kb, (1, cout), jnp.float32))

    keys = jax.random.split(key, 8)
    p = {}
    p['w1'], p['b1'] = conv_p(keys[0], 12, 32)
    p['w2'], p['b2'] = conv_p(keys[1], 32, 64)
    p['g1'], p['be1'] = jnp.ones((1, 64), jnp.float32), jnp.zeros((1, 64), jnp.float32)
    p['w3'], p['b3'] = conv_p(keys[2], 64, 32)
    p['w4'], p['b4'] = conv_p(keys[3], 32, 32)
    p['g2'], p['be2'] = jnp.ones((1, 32), jnp.float32), jnp.zeros((1, 32), jnp.float32)
    p['w5'], p['b5'] = conv_p(keys[4], 32, 32)
    p['w6'], p['b6'] = conv_p(keys[5], 32, 32)
    p['g3'], p['be3'] = jnp.ones((1, 32), jnp.float32), jnp.zeros((1, 32), jnp.float32)
    p['wl'] = 0.1 * jax.random.normal(keys[6], (32, 1), jnp.float32)
    p['bl'] = 0.1 * jax.random.normal(keys[7], (1, 1), jnp.float32)
    return p


# ---------------------------------------------------------------------------
# Pure-JAX reference (for correctness check)
# ---------------------------------------------------------------------------
def _reference_forward(x_ncl, params, eps=_BN_EPS):
    x = jnp.transpose(x_ncl, (0, 2, 1)).astype(jnp.float32)

    def conv(x, w, b):                       # w: (K, Cin, Cout)
        K = w.shape[0]
        L = x.shape[1]
        pad = (K - 1) // 2
        xp = jnp.pad(x, ((0, 0), (pad, pad), (0, 0)))
        y = sum(jnp.einsum('nlc,cd->nld', xp[:, k:k + L, :], w[k]) for k in range(K))
        return y + b

    def bn_relu(x, g, be):
        m = jnp.mean(x, axis=(0, 1), keepdims=True)
        v = jnp.mean(jnp.square(x - m), axis=(0, 1), keepdims=True)
        return jnp.maximum((x - m) / jnp.sqrt(v + eps) * g + be, 0.0)

    def pool(x):
        N, L, C = x.shape
        return jnp.max(x.reshape(N, L // 2, 2, C), axis=2)

    x = conv(x, params['w1'], params['b1']); x = conv(x, params['w2'], params['b2'])
    x = bn_relu(x, params['g1'], params['be1']); x = pool(x)
    x = conv(x, params['w3'], params['b3']); x = conv(x, params['w4'], params['b4'])
    x = bn_relu(x, params['g2'], params['be2']); x = pool(x)
    x = conv(x, params['w5'], params['b5']); x = conv(x, params['w6'], params['b6'])
    x = bn_relu(x, params['g3'], params['be3'])
    return jnp.mean(x, axis=1) @ params['wl'] + params['bl']


if __name__ == "__main__":
    key = jax.random.PRNGKey(0)
    k_x, k_p = jax.random.split(key)

    N, C_in, L = 2, 12, 16
    x = jax.random.normal(k_x, (N, C_in, L), jnp.float32)        # PyTorch NCL input
    params = init_params(k_p)

    fwd = jax.jit(standard_convnet_forward)
    out = jax.block_until_ready(fwd(x, params))

    assert out.shape == (N, 1), out.shape
    assert jnp.all(jnp.isfinite(out))

    ref = jax.block_until_ready(jax.jit(_reference_forward)(x, params))
    assert jnp.max(jnp.abs(out - ref)) < 5e-2, (out, ref)

    print("KERNEL_OK")
</pallas_src>

<mosaic_0001>
module attributes {stable_mosaic.version = 11 : i64} {
  func.func @_convnet_kernel(%arg0: memref<2x16x12xf32, #tpu.memory_space<vmem>>, %arg1: memref<60x32xf32, #tpu.memory_space<vmem>>, %arg2: memref<1x32xf32, #tpu.memory_space<vmem>>, %arg3: memref<160x64xf32, #tpu.memory_space<vmem>>, %arg4: memref<1x64xf32, #tpu.memory_space<vmem>>, %arg5: memref<1x64xf32, #tpu.memory_space<vmem>>, %arg6: memref<1x64xf32, #tpu.memory_space<vmem>>, %arg7: memref<320x32xf32, #tpu.memory_space<vmem>>, %arg8: memref<1x32xf32, #tpu.memory_space<vmem>>, %arg9: memref<160x32xf32, #tpu.memory_space<vmem>>, %arg10: memref<1x32xf32, #tpu.memory_space<vmem>>, %arg11: memref<1x32xf32, #tpu.memory_space<vmem>>, %arg12: memref<1x32xf32, #tpu.memory_space<vmem>>, %arg13: memref<160x32xf32, #tpu.memory_space<vmem>>, %arg14: memref<1x32xf32, #tpu.memory_space<vmem>>, %arg15: memref<160x32xf32, #tpu.memory_space<vmem>>, %arg16: memref<1x32xf32, #tpu.memory_space<vmem>>, %arg17: memref<1x32xf32, #tpu.memory_space<vmem>>, %arg18: memref<1x32xf32, #tpu.memory_space<vmem>>, %arg19: memref<32x1xf32, #tpu.memory_space<vmem>>, %arg20: memref<1x1xf32, #tpu.memory_space<vmem>>, %arg21: memref<2x1xf32, #tpu.memory_space<vmem>>) attributes {dimension_semantics = [], scalar_prefetch = 0 : i64, scratch_operands = 0 : i64, tpu.core_type = #tpu.core_type<tc>} {
    %c0 = arith.constant 0 : index
    %c0_0 = arith.constant 0 : index
    %c0_1 = arith.constant 0 : index
    %0 = vector.load %arg0[%c0, %c0_0, %c0_1] : memref<2x16x12xf32, #tpu.memory_space<vmem>>, vector<2x16x12xf32>
    %c0_2 = arith.constant 0 : index
    %c0_3 = arith.constant 0 : index
    %1 = vector.load %arg1[%c0_2, %c0_3] : memref<60x32xf32, #tpu.memory_space<vmem>>, vector<60x32xf32>
    %c0_4 = arith.constant 0 : index
    %c0_5 = arith.constant 0 : index
    %2 = vector.load %arg2[%c0_4, %c0_5] : memref<1x32xf32, #tpu.memory_space<vmem>>, vector<1x32xf32>
    %cst = arith.constant 0.000000e+00 : f32
    %3 = vector.broadcast %cst : f32 to vector<2x2x12xf32>
    %4 = tpu.concatenate %3, %0, %3 in 1 : vector<2x2x12xf32>, vector<2x16x12xf32>, vector<2x2x12xf32> -> vector<2x20x12xf32>
    %5 = vector.extract_strided_slice %4 {offsets = [0, 0, 0], sizes = [2, 16, 12], strides = [1, 1, 1]} : vector<2x20x12xf32> to vector<2x16x12xf32>
    %6 = vector.extract_strided_slice %4 {offsets = [0, 1, 0], sizes = [2, 16, 12], strides = [1, 1, 1]} : vector<2x20x12xf32> to vector<2x16x12xf32>
    %7 = vector.extract_strided_slice %4 {offsets = [0, 2, 0], sizes = [2, 16, 12], strides = [1, 1, 1]} : vector<2x20x12xf32> to vector<2x16x12xf32>
    %8 = vector.extract_strided_slice %4 {offsets = [0, 3, 0], sizes = [2, 16, 12], strides = [1, 1, 1]} : vector<2x20x12xf32> to vector<2x16x12xf32>
    %9 = vector.extract_strided_slice %4 {offsets = [0, 4, 0], sizes = [2, 16, 12], strides = [1, 1, 1]} : vector<2x20x12xf32> to vector<2x16x12xf32>
    %10 = tpu.concatenate %5, %6, %7, %8, %9 in 2 : vector<2x16x12xf32>, vector<2x16x12xf32>, vector<2x16x12xf32>, vector<2x16x12xf32>, vector<2x16x12xf32> -> vector<2x16x60xf32>
    %11 = vector.shape_cast %10 : vector<2x16x60xf32> to vector<32x60xf32>
    %cst_6 = arith.constant dense<0.000000e+00> : vector<32x32xf32>
    %12 = tpu.matmul %11, %1, %cst_6 {dimension_numbers = #tpu.dot_dimension_numbers<[1], [0], [0], [1], [0, 0, 1, 1], [], []>} : vector<32x60xf32>, vector<60x32xf32>, vector<32x32xf32> -> vector<32x32xf32>
    %13 = vector.broadcast %2 : vector<1x32xf32> to vector<32x32xf32>
    %14 = arith.addf %12, %13 : vector<32x32xf32>
    %15 = vector.shape_cast %14 : vector<32x32xf32> to vector<2x16x32xf32>
    %c0_7 = arith.constant 0 : index
    %c0_8 = arith.constant 0 : index
    %16 = vector.load %arg3[%c0_7, %c0_8] : memref<160x64xf32, #tpu.memory_space<vmem>>, vector<160x64xf32>
    %c0_9 = arith.constant 0 : index
    %c0_10 = arith.constant 0 : index
    %17 = vector.load %arg4[%c0_9, %c0_10] : memref<1x64xf32, #tpu.memory_space<vmem>>, vector<1x64xf32>
    %cst_11 = arith.constant 0.000000e+00 : f32
    %18 = vector.broadcast %cst_11 : f32 to vector<2x2x32xf32>
    %19 = tpu.concatenate %18, %15, %18 in 1 : vector<2x2x32xf32>, vector<2x16x32xf32>, vector<2x2x32xf32> -> vector<2x20x32xf32>
    %20 = vector.extract_strided_slice %19 {offsets = [0, 0, 0], sizes = [2, 16, 32], strides = [1, 1, 1]} : vector<2x20x32xf32> to vector<2x16x32xf32>
    %21 = vector.extract_strided_slice %19 {offsets = [0, 1, 0], sizes = [2, 16, 32], strides = [1, 1, 1]} : vector<2x20x32xf32> to vector<2x16x32xf32>
    %22 = vector.extract_strided_slice %19 {offsets = [0, 2, 0], sizes = [2, 16, 32], strides = [1, 1, 1]} : vector<2x20x32xf32> to vector<2x16x32xf32>
    %23 = vector.extract_strided_slice %19 {offsets = [0, 3, 0], sizes = [2, 16, 32], strides = [1, 1, 1]} : vector<2x20x32xf32> to vector<2x16x32xf32>
    %24 = vector.extract_strided_slice %19 {offsets = [0, 4, 0], sizes = [2, 16, 32], strides = [1, 1, 1]} : vector<2x20x32xf32> to vector<2x16x32xf32>
    %25 = tpu.concatenate %20, %21, %22, %23, %24 in 2 : vector<2x16x32xf32>, vector<2x16x32xf32>, vector<2x16x32xf32>, vector<2x16x32xf32>, vector<2x16x32xf32> -> vector<2x16x160xf32>
    %26 = vector.shape_cast %25 : vector<2x16x160xf32> to vector<32x160xf32>
    %cst_12 = arith.constant dense<0.000000e+00> : vector<32x64xf32>
    %27 = tpu.matmul %26, %16, %cst_12 {dimension_numbers = #tpu.dot_dimension_numbers<[1], [0], [0], [1], [0, 0, 1, 1], [], []>} : vector<32x160xf32>, vector<160x64xf32>, vector<32x64xf32> -> vector<32x64xf32>
    %28 = vector.broadcast %17 : vector<1x64xf32> to vector<32x64xf32>
    %29 = arith.addf %27, %28 : vector<32x64xf32>
    %30 = vector.shape_cast %29 : vector<32x64xf32> to vector<2x16x64xf32>
    %c0_13 = arith.constant 0 : index
    %c0_14 = arith.constant 0 : index
    %31 = vector.load %arg5[%c0_13, %c0_14] : memref<1x64xf32, #tpu.memory_space<vmem>>, vector<1x64xf32>
    %c0_15 = arith.constant 0 : index
    %c0_16 = arith.constant 0 : index
    %32 = vector.load %arg6[%c0_15, %c0_16] : memref<1x64xf32, #tpu.memory_space<vmem>>, vector<1x64xf32>
    %cst_17 = arith.constant dense<0.000000e+00> : vector<64xf32>
    %33 = vector.multi_reduction <add>, %30, %cst_17 [0, 1] : vector<2x16x64xf32> to vector<64xf32>
    %34 = vector.shape_cast %33 : vector<64xf32> to vector<1x1x64xf32>
    %cst_18 = arith.constant 3.200000e+01 : f32
    %35 = vector.broadcast %cst_18 : f32 to vector<1x1x64xf32>
    %36 = arith.divf %34, %35 : vector<1x1x64xf32>
    %37 = vector.broadcast %36 : vector<1x1x64xf32> to vector<2x16x64xf32>
    %38 = arith.subf %30, %37 : vector<2x16x64xf32>
    %39 = arith.mulf %38, %38 : vector<2x16x64xf32>
    %cst_19 = arith.constant dense<0.000000e+00> : vector<64xf32>
    %40 = vector.multi_reduction <add>, %39, %cst_19 [0, 1] : vector<2x16x64xf32> to vector<64xf32>
    %41 = vector.shape_cast %40 : vector<64xf32> to vector<1x1x64xf32>
    %cst_20 = arith.constant 3.200000e+01 : f32
    %42 = vector.broadcast %cst_20 : f32 to vector<1x1x64xf32>
    %43 = arith.divf %41, %42 : vector<1x1x64xf32>
    %44 = vector.broadcast %36 : vector<1x1x64xf32> to vector<2x16x64xf32>
    %45 = arith.subf %30, %44 : vector<2x16x64xf32>
    %cst_21 = arith.constant 9.99999974E-6 : f32
    %46 = vector.broadcast %cst_21 : f32 to vector<1x1x64xf32>
    %47 = arith.addf %43, %46 : vector<1x1x64xf32>
    %48 = math.rsqrt %47 : vector<1x1x64xf32>
    %49 = vector.broadcast %48 : vector<1x1x64xf32> to vector<2x16x64xf32>
    %50 = arith.mulf %45, %49 : vector<2x16x64xf32>
    %51 = vector.shape_cast %31 : vector<1x64xf32> to vector<1x1x64xf32>
    %52 = vector.broadcast %51 : vector<1x1x64xf32> to vector<2x16x64xf32>
    %53 = arith.mulf %50, %52 : vector<2x16x64xf32>
    %54 = vector.shape_cast %32 : vector<1x64xf32> to vector<1x1x64xf32>
    %55 = vector.broadcast %54 : vector<1x1x64xf32> to vector<2x16x64xf32>
    %56 = arith.addf %53, %55 : vector<2x16x64xf32>
    %cst_22 = arith.constant 0.000000e+00 : f32
    %57 = vector.broadcast %cst_22 : f32 to vector<2x16x64xf32>
    %58 = arith.maximumf %56, %57 : vector<2x16x64xf32>
    %59 = vector.shape_cast %58 : vector<2x16x64xf32> to vector<2x8x2x64xf32>
    %cst_23 = arith.constant dense<0xFF800000> : vector<2x8x64xf32>
    %60 = vector.multi_reduction <maximumf>, %59, %cst_23 [2] : vector<2x8x2x64xf32> to vector<2x8x64xf32>
    %c0_24 = arith.constant 0 : index
    %c0_25 = arith.constant 0 : index
    %61 = vector.load %arg7[%c0_24, %c0_25] : memref<320x32xf32, #tpu.memory_space<vmem>>, vector<320x32xf32>
    %c0_26 = arith.constant 0 : index
    %c0_27 = arith.constant 0 : index
    %62 = vector.load %arg8[%c0_26, %c0_27] : memref<1x32xf32, #tpu.memory_space<vmem>>, vector<1x32xf32>
    %cst_28 = arith.constant 0.000000e+00 : f32
    %63 = vector.broadcast %cst_28 : f32 to vector<2x2x64xf32>
    %64 = tpu.concatenate %63, %60, %63 in 1 : vector<2x2x64xf32>, vector<2x8x64xf32>, vector<2x2x64xf32> -> vector<2x12x64xf32>
    %65 = vector.extract_strided_slice %64 {offsets = [0, 0, 0], sizes = [2, 8, 64], strides = [1, 1, 1]} : vector<2x12x64xf32> to vector<2x8x64xf32>
    %66 = vector.extract_strided_slice %64 {offsets = [0, 1, 0], sizes = [2, 8, 64], strides = [1, 1, 1]} : vector<2x12x64xf32> to vector<2x8x64xf32>
    %67 = vector.extract_strided_slice %64 {offsets = [0, 2, 0], sizes = [2, 8, 64], strides = [1, 1, 1]} : vector<2x12x64xf32> to vector<2x8x64xf32>
    %68 = vector.extract_strided_slice %64 {offsets = [0, 3, 0], sizes = [2, 8, 64], strides = [1, 1, 1]} : vector<2x12x64xf32> to vector<2x8x64xf32>
    %69 = vector.extract_strided_slice %64 {offsets = [0, 4, 0], sizes = [2, 8, 64], strides = [1, 1, 1]} : vector<2x12x64xf32> to vector<2x8x64xf32>
    %70 = tpu.concatenate %65, %66, %67, %68, %69 in 2 : vector<2x8x64xf32>, vector<2x8x64xf32>, vector<2x8x64xf32>, vector<2x8x64xf32>, vector<2x8x64xf32> -> vector<2x8x320xf32>
    %71 = vector.shape_cast %70 : vector<2x8x320xf32> to vector<16x320xf32>
    %cst_29 = arith.constant dense<0.000000e+00> : vector<16x32xf32>
    %72 = tpu.matmul %71, %61, %cst_29 {dimension_numbers = #tpu.dot_dimension_numbers<[1], [0], [0], [1], [0, 0, 1, 1], [], []>} : vector<16x320xf32>, vector<320x32xf32>, vector<16x32xf32> -> vector<16x32xf32>
    %73 = vector.broadcast %62 : vector<1x32xf32> to vector<16x32xf32>
    %74 = arith.addf %72, %73 : vector<16x32xf32>
    %75 = vector.shape_cast %74 : vector<16x32xf32> to vector<2x8x32xf32>
    %c0_30 = arith.constant 0 : index
    %c0_31 = arith.constant 0 : index
    %76 = vector.load %arg9[%c0_30, %c0_31] : memref<160x32xf32, #tpu.memory_space<vmem>>, vector<160x32xf32>
    %c0_32 = arith.constant 0 : index
    %c0_33 = arith.constant 0 : index
    %77 = vector.load %arg10[%c0_32, %c0_33] : memref<1x32xf32, #tpu.memory_space<vmem>>, vector<1x32xf32>
    %cst_34 = arith.constant 0.000000e+00 : f32
    %78 = vector.broadcast %cst_34 : f32 to vector<2x2x32xf32>
    %79 = tpu.concatenate %78, %75, %78 in 1 : vector<2x2x32xf32>, vector<2x8x32xf32>, vector<2x2x32xf32> -> vector<2x12x32xf32>
    %80 = vector.extract_strided_slice %79 {offsets = [0, 0, 0], sizes = [2, 8, 32], strides = [1, 1, 1]} : vector<2x12x32xf32> to vector<2x8x32xf32>
    %81 = vector.extract_strided_slice %79 {offsets = [0, 1, 0], sizes = [2, 8, 32], strides = [1, 1, 1]} : vector<2x12x32xf32> to vector<2x8x32xf32>
    %82 = vector.extract_strided_slice %79 {offsets = [0, 2, 0], sizes = [2, 8, 32], strides = [1, 1, 1]} : vector<2x12x32xf32> to vector<2x8x32xf32>
    %83 = vector.extract_strided_slice %79 {offsets = [0, 3, 0], sizes = [2, 8, 32], strides = [1, 1, 1]} : vector<2x12x32xf32> to vector<2x8x32xf32>
    %84 = vector.extract_strided_slice %79 {offsets = [0, 4, 0], sizes = [2, 8, 32], strides = [1, 1, 1]} : vector<2x12x32xf32> to vector<2x8x32xf32>
    %85 = tpu.concatenate %80, %81, %82, %83, %84 in 2 : vector<2x8x32xf32>, vector<2x8x32xf32>, vector<2x8x32xf32>, vector<2x8x32xf32>, vector<2x8x32xf32> -> vector<2x8x160xf32>
    %86 = vector.shape_cast %85 : vector<2x8x160xf32> to vector<16x160xf32>
    %cst_35 = arith.constant dense<0.000000e+00> : vector<16x32xf32>
    %87 = tpu.matmul %86, %76, %cst_35 {dimension_numbers = #tpu.dot_dimension_numbers<[1], [0], [0], [1], [0, 0, 1, 1], [], []>} : vector<16x160xf32>, vector<160x32xf32>, vector<16x32xf32> -> vector<16x32xf32>
    %88 = vector.broadcast %77 : vector<1x32xf32> to vector<16x32xf32>
    %89 = arith.addf %87, %88 : vector<16x32xf32>
    %90 = vector.shape_cast %89 : vector<16x32xf32> to vector<2x8x32xf32>
    %c0_36 = arith.constant 0 : index
    %c0_37 = arith.constant 0 : index
    %91 = vector.load %arg11[%c0_36, %c0_37] : memref<1x32xf32, #tpu.memory_space<vmem>>, vector<1x32xf32>
    %c0_38 = arith.constant 0 : index
    %c0_39 = arith.constant 0 : index
    %92 = vector.load %arg12[%c0_38, %c0_39] : memref<1x32xf32, #tpu.memory_space<vmem>>, vector<1x32xf32>
    %cst_40 = arith.constant dense<0.000000e+00> : vector<32xf32>
    %93 = vector.multi_reduction <add>, %90, %cst_40 [0, 1] : vector<2x8x32xf32> to vector<32xf32>
    %94 = vector.shape_cast %93 : vector<32xf32> to vector<1x1x32xf32>
    %cst_41 = arith.constant 1.600000e+01 : f32
    %95 = vector.broadcast %cst_41 : f32 to vector<1x1x32xf32>
    %96 = arith.divf %94, %95 : vector<1x1x32xf32>
    %97 = vector.broadcast %96 : vector<1x1x32xf32> to vector<2x8x32xf32>
    %98 = arith.subf %90, %97 : vector<2x8x32xf32>
    %99 = arith.mulf %98, %98 : vector<2x8x32xf32>
    %cst_42 = arith.constant dense<0.000000e+00> : vector<32xf32>
    %100 = vector.multi_reduction <add>, %99, %cst_42 [0, 1] : vector<2x8x32xf32> to vector<32xf32>
    %101 = vector.shape_cast %100 : vector<32xf32> to vector<1x1x32xf32>
    %cst_43 = arith.constant 1.600000e+01 : f32
    %102 = vector.broadcast %cst_43 : f32 to vector<1x1x32xf32>
    %103 = arith.divf %101, %102 : vector<1x1x32xf32>
    %104 = vector.broadcast %96 : vector<1x1x32xf32> to vector<2x8x32xf32>
    %105 = arith.subf %90, %104 : vector<2x8x32xf32>
    %cst_44 = arith.constant 9.99999974E-6 : f32
    %106 = vector.broadcast %cst_44 : f32 to vector<1x1x32xf32>
    %107 = arith.addf %103, %106 : vector<1x1x32xf32>
    %108 = math.rsqrt %107 : vector<1x1x32xf32>
    %109 = vector.broadcast %108 : vector<1x1x32xf32> to vector<2x8x32xf32>
    %110 = arith.mulf %105, %109 : vector<2x8x32xf32>
    %111 = vector.shape_cast %91 : vector<1x32xf32> to vector<1x1x32xf32>
    %112 = vector.broadcast %111 : vector<1x1x32xf32> to vector<2x8x32xf32>
    %113 = arith.mulf %110, %112 : vector<2x8x32xf32>
    %114 = vector.shape_cast %92 : vector<1x32xf32> to vector<1x1x32xf32>
    %115 = vector.broadcast %114 : vector<1x1x32xf32> to vector<2x8x32xf32>
    %116 = arith.addf %113, %115 : vector<2x8x32xf32>
    %cst_45 = arith.constant 0.000000e+00 : f32
    %117 = vector.broadcast %cst_45 : f32 to vector<2x8x32xf32>
    %118 = arith.maximumf %116, %117 : vector<2x8x32xf32>
    %119 = vector.shape_cast %118 : vector<2x8x32xf32> to vector<2x4x2x32xf32>
    %cst_46 = arith.constant dense<0xFF800000> : vector<2x4x32xf32>
    %120 = vector.multi_reduction <maximumf>, %119, %cst_46 [2] : vector<2x4x2x32xf32> to vector<2x4x32xf32>
    %c0_47 = arith.constant 0 : index
    %c0_48 = arith.constant 0 : index
    %121 = vector.load %arg13[%c0_47, %c0_48] : memref<160x32xf32, #tpu.memory_space<vmem>>, vector<160x32xf32>
    %c0_49 = arith.constant 0 : index
    %c0_50 = arith.constant 0 : index
    %122 = vector.load %arg14[%c0_49, %c0_50] : memref<1x32xf32, #tpu.memory_space<vmem>>, vector<1x32xf32>
    %cst_51 = arith.constant 0.000000e+00 : f32
    %123 = vector.broadcast %cst_51 : f32 to vector<2x2x32xf32>
    %124 = tpu.concatenate %123, %120, %123 in 1 : vector<2x2x32xf32>, vector<2x4x32xf32>, vector<2x2x32xf32> -> vector<2x8x32xf32>
    %125 = vector.extract_strided_slice %124 {offsets = [0, 0, 0], sizes = [2, 4, 32], strides = [1, 1, 1]} : vector<2x8x32xf32> to vector<2x4x32xf32>
    %126 = vector.extract_strided_slice %124 {offsets = [0, 1, 0], sizes = [2, 4, 32], strides = [1, 1, 1]} : vector<2x8x32xf32> to vector<2x4x32xf32>
    %127 = vector.extract_strided_slice %124 {offsets = [0, 2, 0], sizes = [2, 4, 32], strides = [1, 1, 1]} : vector<2x8x32xf32> to vector<2x4x32xf32>
    %128 = vector.extract_strided_slice %124 {offsets = [0, 3, 0], sizes = [2, 4, 32], strides = [1, 1, 1]} : vector<2x8x32xf32> to vector<2x4x32xf32>
    %129 = vector.extract_strided_slice %124 {offsets = [0, 4, 0], sizes = [2, 4, 32], strides = [1, 1, 1]} : vector<2x8x32xf32> to vector<2x4x32xf32>
    %130 = tpu.concatenate %125, %126, %127, %128, %129 in 2 : vector<2x4x32xf32>, vector<2x4x32xf32>, vector<2x4x32xf32>, vector<2x4x32xf32>, vector<2x4x32xf32> -> vector<2x4x160xf32>
    %131 = vector.shape_cast %130 : vector<2x4x160xf32> to vector<8x160xf32>
    %cst_52 = arith.constant dense<0.000000e+00> : vector<8x32xf32>
    %132 = tpu.matmul %131, %121, %cst_52 {dimension_numbers = #tpu.dot_dimension_numbers<[1], [0], [0], [1], [0, 0, 1, 1], [], []>} : vector<8x160xf32>, vector<160x32xf32>, vector<8x32xf32> -> vector<8x32xf32>
    %133 = vector.broadcast %122 : vector<1x32xf32> to vector<8x32xf32>
    %134 = arith.addf %132, %133 : vector<8x32xf32>
    %135 = vector.shape_cast %134 : vector<8x32xf32> to vector<2x4x32xf32>
    %c0_53 = arith.constant 0 : index
    %c0_54 = arith.constant 0 : index
    %136 = vector.load %arg15[%c0_53, %c0_54] : memref<160x32xf32, #tpu.memory_space<vmem>>, vector<160x32xf32>
    %c0_55 = arith.constant 0 : index
    %c0_56 = arith.constant 0 : index
    %137 = vector.load %arg16[%c0_55, %c0_56] : memref<1x32xf32, #tpu.memory_space<vmem>>, vector<1x32xf32>
    %cst_57 = arith.constant 0.000000e+00 : f32
    %138 = vector.broadcast %cst_57 : f32 to vector<2x2x32xf32>
    %139 = tpu.concatenate %138, %135, %138 in 1 : vector<2x2x32xf32>, vector<2x4x32xf32>, vector<2x2x32xf32> -> vector<2x8x32xf32>
    %140 = vector.extract_strided_slice %139 {offsets = [0, 0, 0], sizes = [2, 4, 32], strides = [1, 1, 1]} : vector<2x8x32xf32> to vector<2x4x32xf32>
    %141 = vector.extract_strided_slice %139 {offsets = [0, 1, 0], sizes = [2, 4, 32], strides = [1, 1, 1]} : vector<2x8x32xf32> to vector<2x4x32xf32>
    %142 = vector.extract_strided_slice %139 {offsets = [0, 2, 0], sizes = [2, 4, 32], strides = [1, 1, 1]} : vector<2x8x32xf32> to vector<2x4x32xf32>
    %143 = vector.extract_strided_slice %139 {offsets = [0, 3, 0], sizes = [2, 4, 32], strides = [1, 1, 1]} : vector<2x8x32xf32> to vector<2x4x32xf32>
    %144 = vector.extract_strided_slice %139 {offsets = [0, 4, 0], sizes = [2, 4, 32], strides = [1, 1, 1]} : vector<2x8x32xf32> to vector<2x4x32xf32>
    %145 = tpu.concatenate %140, %141, %142, %143, %144 in 2 : vector<2x4x32xf32>, vector<2x4x32xf32>, vector<2x4x32xf32>, vector<2x4x32xf32>, vector<2x4x32xf32> -> vector<2x4x160xf32>
    %146 = vector.shape_cast %145 : vector<2x4x160xf32> to vector<8x160xf32>
    %cst_58 = arith.constant dense<0.000000e+00> : vector<8x32xf32>
    %147 = tpu.matmul %146, %136, %cst_58 {dimension_numbers = #tpu.dot_dimension_numbers<[1], [0], [0], [1], [0, 0, 1, 1], [], []>} : vector<8x160xf32>, vector<160x32xf32>, vector<8x32xf32> -> vector<8x32xf32>
    %148 = vector.broadcast %137 : vector<1x32xf32> to vector<8x32xf32>
    %149 = arith.addf %147, %148 : vector<8x32xf32>
    %150 = vector.shape_cast %149 : vector<8x32xf32> to vector<2x4x32xf32>
    %c0_59 = arith.constant 0 : index
    %c0_60 = arith.constant 0 : index
    %151 = vector.load %arg17[%c0_59, %c0_60] : memref<1x32xf32, #tpu.memory_space<vmem>>, vector<1x32xf32>
    %c0_61 = arith.constant 0 : index
    %c0_62 = arith.constant 0 : index
    %152 = vector.load %arg18[%c0_61, %c0_62] : memref<1x32xf32, #tpu.memory_space<vmem>>, vector<1x32xf32>
    %cst_63 = arith.constant dense<0.000000e+00> : vector<32xf32>
    %153 = vector.multi_reduction <add>, %150, %cst_63 [0, 1] : vector<2x4x32xf32> to vector<32xf32>
    %154 = vector.shape_cast %153 : vector<32xf32> to vector<1x1x32xf32>
    %cst_64 = arith.constant 8.000000e+00 : f32
    %155 = vector.broadcast %cst_64 : f32 to vector<1x1x32xf32>
    %156 = arith.divf %154, %155 : vector<1x1x32xf32>
    %157 = vector.broadcast %156 : vector<1x1x32xf32> to vector<2x4x32xf32>
    %158 = arith.subf %150, %157 : vector<2x4x32xf32>
    %159 = arith.mulf %158, %158 : vector<2x4x32xf32>
    %cst_65 = arith.constant dense<0.000000e+00> : vector<32xf32>
    %160 = vector.multi_reduction <add>, %159, %cst_65 [0, 1] : vector<2x4x32xf32> to vector<32xf32>
    %161 = vector.shape_cast %160 : vector<32xf32> to vector<1x1x32xf32>
    %cst_66 = arith.constant 8.000000e+00 : f32
    %162 = vector.broadcast %cst_66 : f32 to vector<1x1x32xf32>
    %163 = arith.divf %161, %162 : vector<1x1x32xf32>
    %164 = vector.broadcast %156 : vector<1x1x32xf32> to vector<2x4x32xf32>
    %165 = arith.subf %150, %164 : vector<2x4x32xf32>
    %cst_67 = arith.constant 9.99999974E-6 : f32
    %166 = vector.broadcast %cst_67 : f32 to vector<1x1x32xf32>
    %167 = arith.addf %163, %166 : vector<1x1x32xf32>
    %168 = math.rsqrt %167 : vector<1x1x32xf32>
    %169 = vector.broadcast %168 : vector<1x1x32xf32> to vector<2x4x32xf32>
    %170 = arith.mulf %165, %169 : vector<2x4x32xf32>
    %171 = vector.shape_cast %151 : vector<1x32xf32> to vector<1x1x32xf32>
    %172 = vector.broadcast %171 : vector<1x1x32xf32> to vector<2x4x32xf32>
    %173 = arith.mulf %170, %172 : vector<2x4x32xf32>
    %174 = vector.shape_cast %152 : vector<1x32xf32> to vector<1x1x32xf32>
    %175 = vector.broadcast %174 : vector<1x1x32xf32> to vector<2x4x32xf32>
    %176 = arith.addf %173, %175 : vector<2x4x32xf32>
    %cst_68 = arith.constant 0.000000e+00 : f32
    %177 = vector.broadcast %cst_68 : f32 to vector<2x4x32xf32>
    %178 = arith.maximumf %176, %177 : vector<2x4x32xf32>
    %cst_69 = arith.constant dense<0.000000e+00> : vector<2x32xf32>
    %179 = vector.multi_reduction <add>, %178, %cst_69 [1] : vector<2x4x32xf32> to vector<2x32xf32>
    %cst_70 = arith.constant 4.000000e+00 : f32
    %180 = vector.broadcast %cst_70 : f32 to vector<2x32xf32>
    %181 = arith.divf %179, %180 : vector<2x32xf32>
    %c0_71 = arith.constant 0 : index
    %c0_72 = arith.constant 0 : index
    %182 = vector.load %arg19[%c0_71, %c0_72] : memref<32x1xf32, #tpu.memory_space<vmem>>, vector<32x1xf32>
    %cst_73 = arith.constant dense<0.000000e+00> : vector<2x1xf32>
    %183 = tpu.matmul %181, %182, %cst_73 {dimension_numbers = #tpu.dot_dimension_numbers<[1], [0], [0], [1], [0, 0, 1, 1], [], []>} : vector<2x32xf32>, vector<32x1xf32>, vector<2x1xf32> -> vector<2x1xf32>
    %c0_74 = arith.constant 0 : index
    %c0_75 = arith.constant 0 : index
    %184 = vector.load %arg20[%c0_74, %c0_75] : memref<1x1xf32, #tpu.memory_space<vmem>>, vector<1x1xf32>
    %185 = vector.broadcast %184 : vector<1x1xf32> to vector<2x1xf32>
    %186 = arith.addf %183, %185 : vector<2x1xf32>
    %c0_76 = arith.constant 0 : index
    %c0_77 = arith.constant 0 : index
    %187 = vector.load %arg21[%c0_76, %c0_77] : memref<2x1xf32, #tpu.memory_space<vmem>>, vector<2x1xf32>
    tpu.vector_store %arg21[%c0_76, %c0_77], %186 {strides = array<i32>} : memref<2x1xf32, #tpu.memory_space<vmem>>, vector<2x1xf32>,
    return
  }
}

</mosaic_0001>

<bundles_post_ra>
// kernel: standard_convnet_forward.1
= control target key start
LH: loop header
LB: loop body
LE: loop exit
PB: predicated region body
PF: predicated region fallthrough
CT: control target
= control target key end

     0   :  { %vm87_vm0 = vcmask 1041408   ;;  %vm131_vm1 = vcmask 1045504   ;;  %vm108_vm2 = vcmask 1046528   ;;  %s2296_s24 = smov 24   ;;  %vm154_vm3 = vcmask 1044480   ;;  %s2304_s27 = smov 96   ;;  %s3247_s0 = inlined_call_operand.vmem [shape: f32[2,16,12], index: 0, kind: input, shape index: {}]   ;;  %s3248_s1 = inlined_call_operand.vmem [shape: f32[60,32], index: 1, kind: input, shape index: {}]   ;;  %s3249_s3 = inlined_call_operand.vmem [shape: f32[160,64], index: 3, kind: input, shape index: {}]   ;;  %s3250_s2 = inlined_call_operand.vmem [shape: f32[1,32], index: 2, kind: input, shape index: {}]   ;;  %s3251_s7 = inlined_call_operand.vmem [shape: f32[320,32], index: 7, kind: input, shape index: {}]   ;;  %s3252_s4 = inlined_call_operand.vmem [shape: f32[1,64], index: 4, kind: input, shape index: {}]   ;;  %s3253_s5 = inlined_call_operand.vmem [shape: f32[1,64], index: 5, kind: input, shape index: {}]   ;;  %s3254_s6 = inlined_call_operand.vmem [shape: f32[1,64], index: 6, kind: input, shape index: {}]   ;;  %s3255_s9 = inlined_call_operand.vmem [shape: f32[160,32], index: 9, kind: input, shape index: {}]   ;;  %s3256_s8 = inlined_call_operand.vmem [shape: f32[1,32], index: 8, kind: input, shape index: {}]   ;;  %s3257_s13 = inlined_call_operand.vmem [shape: f32[160,32], index: 13, kind: input, shape index: {}]   ;;  %s3258_s10 = inlined_call_operand.vmem [shape: f32[1,32], index: 10, kind: input, shape index: {}]   ;;  %s3259_s11 = inlined_call_operand.vmem [shape: f32[1,32], index: 11, kind: input, shape index: {}]   ;;  %s3260_s12 = inlined_call_operand.vmem [shape: f32[1,32], index: 12, kind: input, shape index: {}]   ;;  %s3261_s15 = inlined_call_operand.vmem [shape: f32[160,32], index: 15, kind: input, shape index: {}]   ;;  %s3262_s14 = inlined_call_operand.vmem [shape: f32[1,32], index: 14, kind: input, shape index: {}]   ;;  %s3263_s19 = inlined_call_operand.vmem [shape: f32[32,1], index: 19, kind: input, shape index: {}]   ;;  %s3264_s20 = inlined_call_operand.<no memory space> [shape: f32[1,1], index: 20, kind: input, shape index: {}]   ;;  %s3265_s16 = inlined_call_operand.vmem [shape: f32[1,32], index: 16, kind: input, shape index: {}]   ;;  %s3266_s17 = inlined_call_operand.vmem [shape: f32[1,32], index: 17, kind: input, shape index: {}]   ;;  %s3267_s18 = inlined_call_operand.vmem [shape: f32[1,32], index: 18, kind: input, shape index: {}]   ;;  %s3268_s21 = inlined_call_operand.vmem [shape: f32[2,1], index: 21, kind: output, shape index: {}]  }
   0x1   :  { %3273 = sst [smem:[#allocation3_spill]] %s3247_s0  ;;  %vm177_vm4 = vcmask 1043456   ;;  %vm2300_vm5 = vmmov 1   ;;  %vm200_vm7 = vcmask 97280   ;;  %vm205_vm8 = vcmask 195584  }
   0x2   :  { %3274 = sst [smem:[#allocation4_spill]] %s3248_s1  ;;  %s3279_s26 = sld [smem:[#allocation3_spill]]  ;;  %vm2074_vm6 = vmpackc.low %vm177_vm4, %vm2300_vm5  ;;  %vm210_vm9 = vcmask 293888   ;;  %vm215_vm10 = vcmask 392192   ;;  %vm226_vm11 = vcmask 490496   ;;  %vm448_vm12 = vcmask 261120  }
   0x3   :  { %3275 = sst [smem:[#allocation5_spill]] %s3249_s3  ;;  %s3280_s0 = sld [smem:[#allocation4_spill]]  ;;  %vm453_vm13 = vcmask 523264   ;;  %vm458_vm14 = vcmask 785408   ;;  %vm719_vm15 = vcmask 517120   ;;  %vm889_vm5 = vcmask 1043459  }
   0x4   :  { %3276 = sst [smem:[#allocation6_spill]] %s3250_s2  ;;  %s2297_s3 = smov 12  }
   0x5   :  { %3277 = sst [smem:[#allocation7_spill]] %s3251_s7  ;;  %s3282_s7 = sld [smem:[#allocation6_spill]] }
   0x6   :  { %3278 = sst [smem:[#allocation8_spill]] %s3252_s4  ;;  %s2298_s4 = smov 36  }
   0x7   :  { %s3283_s29 = sld [smem:[#allocation7_spill]]  ;;  %s3284_s1 = sld [smem:[#allocation8_spill]] }
   0x8   :  { %v70_v0 = vld [vmem:[%s3279_s26] sm:$0xff]  ;;  %v71_v1 = vld [vmem:[%s3279_s26 + $0x8] sm:$0xff]  ;;  %v72_v14 = vld [vmem:[%s3279_s26 + $0x10] sm:$0xff] }
   0x9   :  { %v88_v2 = vrot.slane %v70_v0, 6  ;;  %v89_v3 = vrot.slane %v71_v1, 6  ;;  %v74_v4 = vld [vmem:[%s3280_s0] sm:$0xff]  ;;  %v75_v5 = vld [vmem:[%s3280_s0 + $0x8] sm:$0xff]  ;;  %v73_v15 = vld [vmem:[%s3279_s26 + $0x18] sm:$0xff]  ;;  %v91_v21 = vrot.slane %v72_v14, 6 }
   0xa   :  { %v2061_v6 = vpack.c.bf16 %v75_v5, %v74_v4  ;;  %v92_v22 = vrot.slane %v73_v15, 6  ;;  %v76_v27 = vld [vmem:[%s3280_s0 + $0x10] sm:$0xff]  ;;  %v77_v28 = vld [vmem:[%s3280_s0 + $0x18] sm:$0xff]  ;;  %v78_v31 = vld [vmem:[%s3280_s0 + $0x20] sm:$0xff]  ;;  %s2299_s26 = smov 48  }
   0xb   :  { %v2431_v7 = vsel %vm87_vm0, %v88_v2, %v89_v3  ;;  %v2434_v8 = vsel %vm87_vm0, 0.0, %v88_v2  ;;  %v102_v9 = vsel %vm87_vm0, %v89_v3, 0.0  ;;  %v79_v32 = vld [vmem:[%s3280_s0 + $0x28] sm:$0xff]  ;;  %v2478_v38 = vsel %vm87_vm0, 0.0, %v91_v21  ;;  %v80_v43 = vld [vmem:[%s3280_s0 + $0x30] sm:$0xff] }
   0xc   :  { %v132_v10 = vrot.slane %v2434_v8, 2  ;;  %v133_v11 = vrot.slane %v2431_v7, 2  ;;  %v109_v12 = vrot.slane %v2434_v8, 1  ;;  %v110_v13 = vrot.slane %v2431_v7, 1  ;;  %2062 = vmatprep.subr.bf16.mxu1 %v2061_v6  ;;  %v81_v44 = vld [vmem:[%s3280_s0 + $0x38] sm:$0xf] }
   0xd   :  { %v135_v16 = vrot.slane %v102_v9, 2  ;;  %v112_v17 = vrot.slane %v102_v9, 1  ;;  %2064 = vmatpush3.bf16.msra.mxu1 %v2061_v6  ;;  %v156_v20 = vrot.slane %v2431_v7, 3  ;;  %v158_v25 = vrot.slane %v102_v9, 3 }
   0xe   :  { %v134_v18 = vsel %vm131_vm1, %v132_v10, %v133_v11  ;;  %v111_v19 = vsel %vm108_vm2, %v109_v12, %v110_v13  ;;  %v155_v26 = vrot.slane %v2434_v8, 3  ;;  %v179_v29 = vrot.slane %v2431_v7, 4 }
   0xf   :  { %142 = vrot.lane.b32.xlu1 %v134_v18, %s2296_s24  ;;  %119 = vrot.lane.b32.xlu0 %v111_v19, %s2297_s3  ;;  %v136_v23 = vsel %vm131_vm1, %v133_v11, %v135_v16  ;;  %v113_v24 = vsel %vm108_vm2, %v110_v13, %v112_v17  ;;  %v181_v30 = vrot.slane %v102_v9, 4  ;;  %v159_v33 = vsel %vm154_vm3, %v156_v20, %v158_v25 }
  0x10   :  { %v157_v34 = vsel %vm154_vm3, %v155_v26, %v156_v20  ;;  %v178_v35 = vrot.slane %v2434_v8, 4  ;;  %v2474_v36 = vsel %vm87_vm0, %v91_v21, %v92_v22  ;;  %v103_v37 = vsel %vm87_vm0, %v92_v22, 0.0 }
  0x11   :  { %v2065_v39 = vpack.c.bf16 %v77_v28, %v76_v27  ;;  %v2069_v40 = vpack.c.bf16 %v79_v32, %v78_v31  ;;  %v182_v41 = vsel %vm177_vm4, %v179_v29, %v181_v30  ;;  %v115_v42 = vrot.slane %v2474_v36, 1 }
  0x12   :  { %v180_v45 = vsel %vm177_vm4, %v178_v35, %v179_v29  ;;  %v117_v46 = vrot.slane %v103_v37, 1  ;;  %v114_v47 = vrot.slane %v2478_v38, 1  ;;  %v2073_v48 = vpack.c.bf16 %v81_v44, %v80_v43 }
  0x13   :  { %144 = vrot.lane.b32.xlu1 %v136_v23, %s2296_s24  ;;  %121 = vrot.lane.b32.xlu0 %v113_v24, %s2297_s3  ;;  %v138_v49 = vrot.slane %v2474_v36, 2  ;;  %v140_v52 = vrot.slane %v103_v37, 2  ;;  %v137_v53 = vrot.slane %v2478_v38, 2  ;;  %v161_v54 = vrot.slane %v2474_v36, 3 }
  0x14   :  { %2066 = vmatprep.subr.bf16.mxu1 %v2065_v39  ;;  %v118_v50 = vsel %vm108_vm2, %v115_v42, %v117_v46  ;;  %v116_v51 = vsel %vm108_vm2, %v114_v47, %v115_v42  ;;  %v163_v57 = vrot.slane %v103_v37, 3  ;;  %v160_v58 = vrot.slane %v2478_v38, 3 }
  0x15   :  { %2068 = vmatpush3.bf16.msra.mxu1 %v2065_v39  ;;  %v141_v55 = vsel %vm131_vm1, %v138_v49, %v140_v52  ;;  %v139_v56 = vsel %vm131_vm1, %v137_v53, %v138_v49  ;;  %v184_v59 = vrot.slane %v2474_v36, 4  ;;  %v186_v62 = vrot.slane %v103_v37, 4 }
  0x16   :  { %2070 = vmatprep.subr.bf16.mxu1 %v2069_v40  ;;  %v164_v60 = vsel %vm154_vm3, %v161_v54, %v163_v57  ;;  %v162_v61 = vsel %vm154_vm3, %v160_v58, %v161_v54  ;;  %v183_v63 = vrot.slane %v2478_v38, 4 }
  0x17   :  { %167 = vrot.lane.b32.xlu1 %v159_v33, %s2298_s4  ;;  %165 = vrot.lane.b32.xlu0 %v157_v34, %s2298_s4  ;;  %v187_v0 = vsel %vm177_vm4, %v184_v59, %v186_v62  ;;  %v2301_v34 = vmov 0.0|0.0  }
  0x18   :  { %v185_v1 = vsel %vm177_vm4, %v183_v63, %v184_v59  ;;  %v1911_v59 = vld [vmem:[%s3282_s7] ss:$0 sm:$0xff] }
  0x19   :  { %2072 = vmatpush3.bf16.msra.mxu1 %v2069_v40 }
  0x1a   :  { %2075 = vmatprep.subr.msk.bf16.mxu1 %vm2074_vm6, %v2073_v48 }
  0x1b   :  { %190 = vrot.lane.b32.xlu1 %v182_v41, %s2299_s26  ;;  %188 = vrot.lane.b32.xlu0 %v180_v45, %s2299_s26 }
  0x1d   :  { %2078 = vmatpush3.bf16.msk.msra.mxu1 %vm2074_vm6, %v2073_v48  ;;  %vm891_vm6 = vcmask 1044484  }
  0x1e   :  { %2079 = vmatprep.subr.bf16.mxu1 %v2301_v34 }
  0x1f   :  { %125 = vrot.lane.b32.xlu1 %v118_v50, %s2297_s3  ;;  %123 = vrot.lane.b32.xlu0 %v116_v51, %s2297_s3  ;;  %s3281_s3 = sld [smem:[#allocation5_spill]] }
  0x23   :  { %148 = vrot.lane.b32.xlu1 %v141_v55, %s2296_s24  ;;  %146 = vrot.lane.b32.xlu0 %v139_v56, %s2296_s24  ;;  %s2303_s24 = smov 32  }
  0x25   :  { %v327_v35 = vld [vmem:[%s3281_s3] sm:$0xff]  ;;  %v329_v37 = vld [vmem:[%s3281_s3 + $0x10] sm:$0xff]  ;;  %v330_v39 = vld [vmem:[%s3281_s3 + $0x18] sm:$0xff] }
  0x26   :  { %v2083_v40 = vpack.c.bf16 %v330_v39, %v329_v37  ;;  %v331_v41 = vld [vmem:[%s3281_s3 + $0x20] sm:$0xff]  ;;  %v332_v42 = vld [vmem:[%s3281_s3 + $0x28] sm:$0xff]  ;;  %v333_v44 = vld [vmem:[%s3281_s3 + $0x30] sm:$0xff] }
  0x27   :  { %171 = vrot.lane.b32.xlu1 %v164_v60, %s2298_s4  ;;  %169 = vrot.lane.b32.xlu0 %v162_v61, %s2298_s4  ;;  %v2086_v43 = vpack.c.bf16 %v332_v42, %v331_v41  ;;  %v334_v45 = vld [vmem:[%s3281_s3 + $0x38] sm:$0xff]  ;;  %v335_v47 = vld [vmem:[%s3281_s3 + $0x40] sm:$0xff] }
  0x28   :  { %v2089_v46 = vpack.c.bf16 %v334_v45, %v333_v44  ;;  %v336_v48 = vld [vmem:[%s3281_s3 + $0x48] sm:$0xff]  ;;  %v337_v50 = vld [vmem:[%s3281_s3 + $0x50] sm:$0xff]  ;;  %v338_v51 = vld [vmem:[%s3281_s3 + $0x58] sm:$0xff] }
  0x29   :  { %v2092_v49 = vpack.c.bf16 %v336_v48, %v335_v47  ;;  %v2095_v52 = vpack.c.bf16 %v338_v51, %v337_v50  ;;  %v339_v53 = vld [vmem:[%s3281_s3 + $0x60] sm:$0xff]  ;;  %v340_v54 = vld [vmem:[%s3281_s3 + $0x68] sm:$0xff]  ;;  %v341_v56 = vld [vmem:[%s3281_s3 + $0x70] sm:$0xff] }
  0x2a   :  { %v2098_v55 = vpack.c.bf16 %v340_v54, %v339_v53  ;;  %v342_v57 = vld [vmem:[%s3281_s3 + $0x78] sm:$0xff]  ;;  %v343_v60 = vld [vmem:[%s3281_s3 + $0x80] sm:$0xff]  ;;  %v344_v61 = vld [vmem:[%s3281_s3 + $0x88] sm:$0xff] }
  0x2b   :  { %194 = vrot.lane.b32.xlu1 %v187_v0, %s2299_s26  ;;  %192 = vrot.lane.b32.xlu0 %v185_v1, %s2299_s26  ;;  %v2101_v58 = vpack.c.bf16 %v342_v57, %v341_v56  ;;  %v2104_v63 = vpack.c.bf16 %v344_v61, %v343_v60 }
  0x81   :  { %v143_v2 = vpop.permute.xlu1 %142  ;;  %v120_v3 = vpop.permute.xlu0 %119 }
  0x82   :  { %v201_v6 = vsel %vm200_vm7, %v2434_v8, %v120_v3 }
  0x83   :  { %v206_v13 = vsel %vm205_vm8, %v201_v6, %v143_v2 }
  0x85   :  { %v145_v4 = vpop.permute.xlu1 %144  ;;  %v122_v5 = vpop.permute.xlu0 %121 }
  0x86   :  { %v202_v9 = vsel %vm200_vm7, %v2431_v7, %v122_v5  ;;  %v346_v5 = vld [vmem:[%s3281_s3 + $0x98] sm:$0xff] }
  0x87   :  { %v207_v12 = vsel %vm205_vm8, %v202_v9, %v145_v4  ;;  %v345_v4 = vld [vmem:[%s3281_s3 + $0x90] sm:$0xff] }
  0x88   :  { %v2107_v9 = vpack.c.bf16 %v346_v5, %v345_v4 }
  0x89   :  { %v168_v10 = vpop.permute.xlu1 %167  ;;  %v166_v11 = vpop.permute.xlu0 %165 }
  0x8a   :  { %v212_v14 = vsel %vm210_vm9, %v207_v12, %v168_v10  ;;  %v211_v15 = vsel %vm210_vm9, %v206_v13, %v166_v11 }
  0x8d   :  { %v191_v16 = vpop.permute.xlu1 %190  ;;  %v189_v17 = vpop.permute.xlu0 %188 }
  0x8e   :  { %v217_v8 = vsel %vm215_vm10, %v212_v14, %v191_v16  ;;  %v216_v7 = vsel %vm215_vm10, %v211_v15, %v189_v17 }
  0x8f   :  { %2025 = vmatprep.mubr.msk.f32.mxu1 %vm226_vm11, %v216_v7 }
  0x90   :  { %2026 = vmatmul.mubr.msk.f32.vlgmr.msra.gmra.mrb[0].mxu1 %vm226_vm11, %v217_v8 }
  0x91   :  { %v126_v18 = vpop.permute.xlu1 %125  ;;  %v124_v19 = vpop.permute.xlu0 %123 }
  0x92   :  { %v204_v24 = vsel %vm200_vm7, %v2474_v36, %v126_v18  ;;  %v203_v25 = vsel %vm200_vm7, %v2478_v38, %v124_v19  ;;  %v328_v36 = vld [vmem:[%s3281_s3 + $0x8] sm:$0xff]  ;;  %s2302_s3 = smov 64   ;;  %vm893_vm7 = vcmask 1045509  }
  0x93   :  { %v2080_v38 = vpack.c.bf16 %v328_v36, %v327_v35 }
  0x95   :  { %v149_v20 = vpop.permute.xlu1 %148  ;;  %v147_v21 = vpop.permute.xlu0 %146  ;;  %2081 = vmatpush1.bf16.msra.mxu1 %v2080_v38 }
  0x96   :  { %v209_v26 = vsel %vm205_vm8, %v204_v24, %v149_v20  ;;  %v208_v27 = vsel %vm205_vm8, %v203_v25, %v147_v21  ;;  %2082 = vmatprep.subr.bf16.mxu1 %v2301_v34  ;;  %vm895_vm8 = vcmask 1046534  }
  0x99   :  { %v172_v22 = vpop.permute.xlu1 %171  ;;  %v170_v23 = vpop.permute.xlu0 %169  ;;  %2084 = vmatpush1.bf16.msra.mxu1 %v2083_v40 }
  0x9a   :  { %v214_v28 = vsel %vm210_vm9, %v209_v26, %v172_v22  ;;  %v213_v29 = vsel %vm210_vm9, %v208_v27, %v170_v23  ;;  %2085 = vmatprep.subr.bf16.mxu1 %v2301_v34  ;;  %vm899_vm9 = vcmask 1041409  }
  0x9d   :  { %v195_v30 = vpop.permute.xlu1 %194  ;;  %v193_v31 = vpop.permute.xlu0 %192  ;;  %2087 = vmatpush1.bf16.msra.mxu1 %v2086_v43 }
  0x9e   :  { %v219_v32 = vsel %vm215_vm10, %v214_v28, %v195_v30  ;;  %v218_v33 = vsel %vm215_vm10, %v213_v29, %v193_v31  ;;  %2088 = vmatprep.subr.bf16.mxu1 %v2301_v34  ;;  %vm897_vm10 = vcmask 1047559  }
  0x9f   :  { %2028 = vmatprep.mubr.msk.f32.mxu1 %vm226_vm11, %v218_v33 }
  0xa0   :  { %2029 = vmatmul.mubr.msk.f32.gmra.mrb[2].mxu1 %vm226_vm11, %v219_v32 }
  0xa1   :  { %2090 = vmatpush1.bf16.msra.mxu1 %v2089_v46 }
  0xa2   :  { %2091 = vmatprep.subr.bf16.mxu1 %v2301_v34 }
  0xa5   :  { %2093 = vmatpush1.bf16.msra.mxu1 %v2092_v49 }
  0xa6   :  { %2094 = vmatprep.subr.bf16.mxu1 %v2301_v34 }
  0xa9   :  { %2096 = vmatpush1.bf16.msra.mxu1 %v2095_v52 }
  0xaa   :  { %2097 = vmatprep.subr.bf16.mxu1 %v2301_v34 }
  0xad   :  { %2099 = vmatpush1.bf16.msra.mxu1 %v2098_v55 }
  0xae   :  { %2100 = vmatprep.subr.bf16.mxu1 %v2301_v34 }
  0xb1   :  { %2102 = vmatpush1.bf16.msra.mxu1 %v2101_v58 }
  0xb2   :  { %2103 = vmatprep.subr.bf16.mxu1 %v2301_v34 }
  0xb5   :  { %2105 = vmatpush1.bf16.msra.mxu1 %v2104_v63 }
  0xb6   :  { %2106 = vmatprep.subr.bf16.mxu1 %v2301_v34 }
  0xb9   :  { %2108 = vmatpush1.bf16.msra.mxu1 %v2107_v9 }
 0x163   :  { %v2027_v62 = vpop.f32.mrb[0].mxu1 }
 0x164   :  { %v314_v0 = vadd.f32 %v2027_v62, %v1911_v59  ;;  %v308_v1 = vpop.f32.mrb[1].mxu1 }
 0x165   :  { %v309_v2 = vadd.f32 %v1911_v59, %v308_v1 }
 0x166   :  { %v353_v3 = vrot.slane %v314_v0, 6 }
 0x167   :  { %v352_v6 = vrot.slane %v309_v2, 6 }
 0x168   :  { %v366_v10 = vsel %vm87_vm0, %v353_v3, 0.0 }
 0x169   :  { %v397_v11 = vrot.slane %v366_v10, 2  ;;  %v2616_v12 = vsel %vm87_vm0, %v352_v6, %v353_v3  ;;  %v2619_v13 = vsel %vm87_vm0, 0.0, %v352_v6  ;;  %v375_v14 = vrot.slane %v366_v10, 1 }
 0x16a   :  { %v372_v15 = vrot.slane %v2619_v13, 1  ;;  %v394_v16 = vrot.slane %v2619_v13, 2  ;;  %v438_v17 = vrot.slane %v2619_v13, 4  ;;  %v441_v8 = vrot.slane %v366_v10, 4 }
 0x16b   :  { %v439_v7 = vrot.slane %v2616_v12, 4  ;;  %v395_v18 = vrot.slane %v2616_v12, 2  ;;  %v373_v19 = vrot.slane %v2616_v12, 1  ;;  %v419_v20 = vrot.slane %v366_v10, 3 }
 0x16c   :  { %v416_v21 = vrot.slane %v2619_v13, 3  ;;  %v417_v22 = vrot.slane %v2616_v12, 3 }
 0x16d   :  { %v440_v23 = vsel %vm177_vm4, %v438_v17, %v439_v7  ;;  %v396_v24 = vsel %vm131_vm1, %v394_v16, %v395_v18  ;;  %v398_v25 = vsel %vm131_vm1, %v395_v18, %v397_v11  ;;  %v374_v26 = vsel %vm108_vm2, %v372_v15, %v373_v19 }
 0x16e   :  { %1918 = vmatprep.mubr.msk.f32.mxu1 %vm448_vm12, %v440_v23  ;;  %v2270_v27 = vpack.i.bf16 %v398_v25, %v396_v24  ;;  %v376_v28 = vsel %vm108_vm2, %v373_v19, %v375_v14  ;;  %v442_v30 = vsel %vm177_vm4, %v439_v7, %v441_v8  ;;  %v418_v31 = vsel %vm154_vm3, %v416_v21, %v417_v22 }
 0x16f   :  { %v2265_v29 = vpack.i.bf16 %v376_v28, %v374_v26  ;;  %v420_v32 = vsel %vm154_vm3, %v417_v22, %v419_v20  ;;  %v865_v28 = vld [vmem:[%s3283_s29 + $0x108] sm:$0xff] }
 0x170   :  { %2271 = vrot.lane.b32.xlu1 %v2270_v27, %s2302_s3  ;;  %v2275_v35 = vpack.i.bf16 %v420_v32, %v418_v31  ;;  %v864_v27 = vld [vmem:[%s3283_s29 + $0x100] sm:$0xff]  ;;  %v867_v31 = vld [vmem:[%s3283_s29 + $0x118] sm:$0xff] }
 0x171   :  { %2266 = vrot.lane.b32.xlu0 %v2265_v29, %s2303_s24  ;;  %v2141_v29 = vpack.c.bf16 %v865_v28, %v864_v27  ;;  %v842_v28 = vld [vmem:[%s3283_s29 + $0x50] sm:$0xff] }
 0x173   :  { %v2030_v33 = vpop.f32.mrb[2].mxu1  ;;  %2142 = vmatprep.subr.bf16.mxu1 %v2141_v29 }
 0x174   :  { %v324_v36 = vadd.f32 %v2030_v33, %v1911_v59  ;;  %v318_v37 = vpop.f32.mrb[3].mxu1  ;;  %v868_v33 = vld [vmem:[%s3283_s29 + $0x120] sm:$0xff] }
 0x175   :  { %v319_v38 = vadd.f32 %v1911_v59, %v318_v37  ;;  %2276 = vrot.lane.b32.xlu0 %v2275_v35, %s2304_s27  ;;  %v869_v35 = vld [vmem:[%s3283_s29 + $0x128] sm:$0xff] }
 0x176   :  { %v356_v39 = vrot.slane %v324_v36, 6  ;;  %v870_v36 = vld [vmem:[%s3283_s29 + $0x130] sm:$0xff]  ;;  %v2149_v37 = vpack.c.bf16 %v869_v35, %v868_v33 }
 0x177   :  { %v355_v40 = vrot.slane %v319_v38, 6  ;;  %v871_v38 = vld [vmem:[%s3283_s29 + $0x138] sm:$0xff] }
 0x178   :  { %v367_v41 = vsel %vm87_vm0, %v356_v39, 0.0 }
 0x179   :  { %v357_v42 = vsel %vm87_vm0, %v355_v40, %v356_v39  ;;  %v365_v43 = vsel %vm87_vm0, 0.0, %v355_v40  ;;  %v380_v48 = vrot.slane %v367_v41, 1  ;;  %v424_v55 = vrot.slane %v367_v41, 3  ;;  %v1917_v40 = vld [vmem:[%s3284_s1] ss:$0 sm:$0xff] }
 0x17a   :  { %v399_v44 = vrot.slane %v365_v43, 2  ;;  %v400_v45 = vrot.slane %v357_v42, 2  ;;  %v377_v46 = vrot.slane %v365_v43, 1  ;;  %v378_v47 = vrot.slane %v357_v42, 1 }
 0x17b   :  { %v421_v51 = vrot.slane %v365_v43, 3  ;;  %v422_v52 = vrot.slane %v357_v42, 3  ;;  %v402_v56 = vrot.slane %v367_v41, 2  ;;  %v443_v10 = vrot.slane %v365_v43, 4 }
 0x17c   :  { %v401_v49 = vsel %vm131_vm1, %v399_v44, %v400_v45  ;;  %v379_v50 = vsel %vm108_vm2, %v377_v46, %v378_v47  ;;  %v381_v53 = vsel %vm108_vm2, %v378_v47, %v380_v48  ;;  %v444_v11 = vrot.slane %v357_v42, 4  ;;  %v832_v44 = vld [vmem:[%s3283_s29] sm:$0xff]  ;;  %v833_v47 = vld [vmem:[%s3283_s29 + $0x8] sm:$0xff]  ;;  %v850_v48 = vld [vmem:[%s3283_s29 + $0x90] sm:$0xff] }
 0x17d   :  { %408 = vrot.lane.b32.xlu0 %v401_v49, %s2302_s3  ;;  %386 = vrot.lane.b32.xlu1 %v379_v50, %s2303_s24  ;;  %v423_v54 = vsel %vm154_vm3, %v421_v51, %v422_v52  ;;  %v425_v57 = vsel %vm154_vm3, %v422_v52, %v424_v55  ;;  %v403_v58 = vsel %vm131_vm1, %v400_v45, %v402_v56  ;;  %v446_v7 = vrot.slane %v367_v41, 4  ;;  %v851_v49 = vld [vmem:[%s3283_s29 + $0x98] sm:$0xff]  ;;  %v834_v52 = vld [vmem:[%s3283_s29 + $0x10] sm:$0xff] }
 0x17e   :  { %v445_v17 = vsel %vm177_vm4, %v443_v10, %v444_v11  ;;  %v2153_v39 = vpack.c.bf16 %v871_v38, %v870_v36  ;;  %v2111_v50 = vpack.c.bf16 %v833_v47, %v832_v44  ;;  %v2113_v51 = vpack.c.bf16 %v851_v49, %v850_v48  ;;  %v853_v56 = vld [vmem:[%s3283_s29 + $0xa8] sm:$0xff]  ;;  %v838_v10 = vld [vmem:[%s3283_s29 + $0x30] sm:$0xff] }
 0x17f   :  { %v447_v21 = vsel %vm177_vm4, %v444_v11, %v446_v7  ;;  %v839_v11 = vld [vmem:[%s3283_s29 + $0x38] sm:$0xff]  ;;  %v845_v38 = vld [vmem:[%s3283_s29 + $0x68] sm:$0xff] }
 0x181   :  { %388 = vrot.lane.b32.xlu0 %v381_v53, %s2303_s24  ;;  %430 = vrot.lane.b32.xlu1 %v423_v54, %s2304_s27  ;;  %v835_v53 = vld [vmem:[%s3283_s29 + $0x18] sm:$0xff]  ;;  %v852_v54 = vld [vmem:[%s3283_s29 + $0xa0] sm:$0xff] }
 0x185   :  { %432 = vrot.lane.b32.xlu0 %v425_v57, %s2304_s27  ;;  %410 = vrot.lane.b32.xlu1 %v403_v58, %s2302_s3  ;;  %v2115_v58 = vpack.c.bf16 %v835_v53, %v834_v52 }
 0x1e2   :  { %v2272_v59 = vpop.permute.xlu1 %2271 }
 0x1e3   :  { %v2267_v60 = vpop.permute.xlu0 %2266  ;;  %v2273_v62 = vunpack.i.l.bf16 %v2272_v59  ;;  %v2274_v3 = vunpack.i.h.bf16 %v2272_v59 }
 0x1e4   :  { %v2268_v61 = vunpack.i.l.bf16 %v2267_v60  ;;  %v2269_v63 = vunpack.i.h.bf16 %v2267_v60 }
 0x1e6   :  { %v449_v0 = vsel %vm448_vm12, %v2619_v13, %v2268_v61  ;;  %v450_v9 = vsel %vm448_vm12, %v2616_v12, %v2269_v63  ;;  %v2117_v61 = vpack.c.bf16 %v853_v56, %v852_v54  ;;  %v837_v63 = vld [vmem:[%s3283_s29 + $0x28] sm:$0xff] }
 0x1e7   :  { %v2277_v1 = vpop.permute.xlu0 %2276  ;;  %v454_v4 = vsel %vm453_vm13, %v449_v0, %v2273_v62  ;;  %v455_v13 = vsel %vm453_vm13, %v450_v9, %v2274_v3  ;;  %v836_v62 = vld [vmem:[%s3283_s29 + $0x20] sm:$0xff]  ;;  %v854_v0 = vld [vmem:[%s3283_s29 + $0xb0] sm:$0xff] }
 0x1e8   :  { %v2278_v2 = vunpack.i.l.bf16 %v2277_v1  ;;  %v2279_v5 = vunpack.i.h.bf16 %v2277_v1  ;;  %v855_v1 = vld [vmem:[%s3283_s29 + $0xb8] sm:$0xff] }
 0x1e9   :  { %v2121_v9 = vpack.c.bf16 %v855_v1, %v854_v0 }
 0x1ea   :  { %v459_v6 = vsel %vm458_vm14, %v454_v4, %v2278_v2  ;;  %v460_v14 = vsel %vm458_vm14, %v455_v13, %v2279_v5  ;;  %v2119_v5 = vpack.c.bf16 %v837_v63, %v836_v62 }
 0x1eb   :  { %542 = vmatmul.mubr.f32.vlgmr.msra.gmra.mrb[4].mxu1 %v459_v6 }
 0x1ec   :  { %1919 = vmatprep.mubr.msk.f32.mxu1 %vm448_vm12, %v442_v30  ;;  %2144 = vmatpush3.bf16.msra.mxu1 %v2141_v29  ;;  %v866_v30 = vld [vmem:[%s3283_s29 + $0x110] sm:$0xff]  ;;  %v843_v29 = vld [vmem:[%s3283_s29 + $0x58] sm:$0xff] }
 0x1ed   :  { %v2145_v32 = vpack.c.bf16 %v867_v31, %v866_v30  ;;  %v860_v31 = vld [vmem:[%s3283_s29 + $0xe0] sm:$0xff]  ;;  %v2131_v35 = vpack.c.bf16 %v843_v29, %v842_v28 }
 0x1ef   :  { %v387_v15 = vpop.permute.xlu1 %386  ;;  %v409_v16 = vpop.permute.xlu0 %408  ;;  %547 = vmatmul.mubr.f32.gmra.mrb[6].mxu1 %v460_v14  ;;  %2146 = vmatprep.subr.bf16.mxu1 %v2145_v32 }
 0x1f0   :  { %v451_v8 = vsel %vm448_vm12, %v365_v43, %v387_v15  ;;  %1920 = vmatprep.mubr.msk.f32.mxu1 %vm448_vm12, %v445_v17  ;;  %2148 = vmatpush3.bf16.msra.mxu1 %v2145_v32  ;;  %v849_v43 = vld [vmem:[%s3283_s29 + $0x88] sm:$0xff]  ;;  %v856_v15 = vld [vmem:[%s3283_s29 + $0xc0] sm:$0xff] }
 0x1f1   :  { %v456_v12 = vsel %vm453_vm13, %v451_v8, %v409_v16  ;;  %2150 = vmatprep.subr.bf16.mxu1 %v2149_v37  ;;  %v857_v16 = vld [vmem:[%s3283_s29 + $0xc8] sm:$0xff]  ;;  %v2123_v8 = vpack.c.bf16 %v839_v11, %v838_v10  ;;  %v1922_v11 = vld [vmem:[%s3253_s5] ss:$0 sm:$0xff] }
 0x1f2   :  { %v861_v32 = vld [vmem:[%s3283_s29 + $0xe8] sm:$0xff] }
 0x1f3   :  { %v431_v18 = vpop.permute.xlu1 %430  ;;  %v389_v19 = vpop.permute.xlu0 %388  ;;  %v2133_v36 = vpack.c.bf16 %v861_v32, %v860_v31 }
 0x1f4   :  { %v461_v20 = vsel %vm458_vm14, %v456_v12, %v431_v18  ;;  %v452_v22 = vsel %vm448_vm12, %v357_v42, %v389_v19  ;;  %2152 = vmatpush3.bf16.msra.mxu1 %v2149_v37  ;;  %v848_v42 = vld [vmem:[%s3283_s29 + $0x80] sm:$0xff]  ;;  %v2125_v12 = vpack.c.bf16 %v857_v16, %v856_v15  ;;  %v841_v19 = vld [vmem:[%s3283_s29 + $0x48] sm:$0xff] }
 0x1f5   :  { %552 = vmatmul.mubr.f32.gmra.mrb[8].mxu1 %v461_v20  ;;  %2154 = vmatprep.subr.bf16.mxu1 %v2153_v39  ;;  %v2109_v46 = vpack.c.bf16 %v849_v43, %v848_v42  ;;  %v840_v18 = vld [vmem:[%s3283_s29 + $0x40] sm:$0xff] }
 0x1f6   :  { %1921 = vmatprep.mubr.msk.f32.mxu1 %vm448_vm12, %v447_v21  ;;  %v858_v21 = vld [vmem:[%s3283_s29 + $0xd0] sm:$0xff]  ;;  %v844_v37 = vld [vmem:[%s3283_s29 + $0x60] sm:$0xff] }
 0x1f7   :  { %v411_v23 = vpop.permute.xlu1 %410  ;;  %v433_v24 = vpop.permute.xlu0 %432  ;;  %2110 = vmatprep.subr.bf16.mxu0 %v2109_v46 }
 0x1f8   :  { %v457_v25 = vsel %vm453_vm13, %v452_v22, %v411_v23  ;;  %2156 = vmatpush3.bf16.msra.mxu1 %v2153_v39  ;;  %2112 = vmatpush3.bf16.msra.mxu0 %v2111_v50  ;;  %v859_v22 = vld [vmem:[%s3283_s29 + $0xd8] sm:$0xff] }
 0x1f9   :  { %v462_v26 = vsel %vm458_vm14, %v457_v25, %v433_v24  ;;  %2187 = vmatprep.subr.bf16.mxu1 %v2301_v34  ;;  %2114 = vmatprep.subr.bf16.mxu0 %v2113_v51  ;;  %v2127_v25 = vpack.c.bf16 %v841_v19, %v840_v18  ;;  %v2129_v27 = vpack.c.bf16 %v859_v22, %v858_v21 }
 0x1fa   :  { %557 = vmatmul.mubr.f32.gmra.mrb[10].mxu1 %v462_v26 }
 0x1fc   :  { %2116 = vmatpush3.bf16.msra.mxu0 %v2115_v58 }
 0x1fd   :  { %2118 = vmatprep.subr.bf16.mxu0 %v2117_v61 }
 0x200   :  { %2120 = vmatpush3.bf16.msra.mxu0 %v2119_v5  ;;  %v2305_v5 = vmov 1983009808  }
 0x201   :  { %2122 = vmatprep.subr.bf16.mxu0 %v2121_v9  ;;  %v639_v9 = vlaneseq }
 0x204   :  { %2124 = vmatpush3.bf16.msra.mxu0 %v2123_v8 }
 0x205   :  { %2126 = vmatprep.subr.bf16.mxu0 %v2125_v12 }
 0x208   :  { %2128 = vmatpush3.bf16.msra.mxu0 %v2127_v25 }
 0x209   :  { %2130 = vmatprep.subr.bf16.mxu0 %v2129_v27 }
 0x20c   :  { %2132 = vmatpush3.bf16.msra.mxu0 %v2131_v35 }
 0x20d   :  { %2134 = vmatprep.subr.bf16.mxu0 %v2133_v36 }
 0x2be   :  { %v543_v41 = vpop.f32.mrb[4].mxu1 }
 0x2bf   :  { %v545_v45 = vpop.f32.mrb[5].mxu1  ;;  %v2730_v55 = vadd.f32 %v1917_v40, %v543_v41  ;;  %v2135_v41 = vpack.c.bf16 %v845_v38, %v844_v37 }
 0x2c1   :  { %v564_v2 = vsel %vm453_vm13, %v2730_v55, 0.0  ;;  %2136 = vmatpush3.bf16.msra.mxu0 %v2135_v41 }
 0x2c2   :  { %v548_v57 = vpop.f32.mrb[6].mxu1 }
 0x2c3   :  { %v2735_v59 = vadd.f32 %v1917_v40, %v548_v57  ;;  %v550_v60 = vpop.f32.mrb[7].mxu1 }
 0x2c5   :  { %v565_v3 = vsel %vm453_vm13, %v2735_v59, 0.0 }
 0x2c6   :  { %v566_v4 = vadd.f32 %v565_v3, %v564_v2 }
 0x2c8   :  { %v553_v6 = vpop.f32.mrb[8].mxu1 }
 0x2c9   :  { %v554_v13 = vadd.f32 %v1917_v40, %v553_v6  ;;  %v555_v14 = vpop.f32.mrb[9].mxu1  ;;  %v637_v6 = vunpack.c.l.s4 %v2305_v5 }
 0x2ca   :  { %v640_v14 = vshrl.u32 %v639_v9, 7 }
 0x2cb   :  { %v567_v17 = vsel %vm453_vm13, %v554_v13, 0.0 }
 0x2cc   :  { %v568_v7 = vadd.f32 %v567_v17, %v566_v4 }
 0x2cd   :  { %v558_v20 = vpop.f32.mrb[10].mxu1 }
 0x2ce   :  { %v559_v23 = vadd.f32 %v1917_v40, %v558_v20  ;;  %v560_v24 = vpop.f32.mrb[11].mxu1 }
 0x2d0   :  { %v569_v26 = vsel %vm453_vm13, %v559_v23, 0.0 }
 0x2d1   :  { %v570_v30 = vadd.f32 %v569_v26, %v568_v7  ;;  %v1923_v7 = vld [vmem:[%s3254_s6] ss:$0 sm:$0xff] }
 0x2d3   :  { %v571_v33 = vrot.slane %v570_v30, 4 }
 0x2d5   :  { %v572_v39 = vadd.f32 %v571_v33, %v570_v30 }
 0x2d7   :  { %v573_v40 = vrot.slane %v572_v39, 2 }
 0x2d9   :  { %v574_v42 = vadd.f32 %v573_v40, %v572_v39 }
 0x2db   :  { %v575_v43 = vrot.slane %v574_v42, 1 }
 0x2dd   :  { %v576_v44 = vadd.f32 %v575_v43, %v574_v42 }
 0x2df   :  { %v578_v45 = vmul.f32 0.03125, %v576_v44 }
 0x2e1   :  { %v579_v46 = vsub.f32 %v2730_v55, %v578_v45  ;;  %v580_v47 = vsub.f32 %v2735_v59, %v578_v45  ;;  %v581_v48 = vsub.f32 %v554_v13, %v578_v45  ;;  %v582_v49 = vsub.f32 %v559_v23, %v578_v45 }
 0x2e2   :  { %v638_v13 = vunpack.c.0.s8 %v637_v6 }
 0x2e3   :  { %v583_v50 = vmul.f32 %v579_v46, %v579_v46  ;;  %v584_v51 = vmul.f32 %v580_v47, %v580_v47  ;;  %v585_v52 = vmul.f32 %v581_v48, %v581_v48  ;;  %v586_v53 = vmul.f32 %v582_v49, %v582_v49 }
 0x2e4   :  { %v2809_v21 = vsub.s32 %v638_v13, %v640_v14 }
 0x2e5   :  { %v587_v54 = vsel %vm453_vm13, %v583_v50, 0.0  ;;  %v588_v56 = vsel %vm453_vm13, %v584_v51, 0.0  ;;  %v590_v58 = vsel %vm453_vm13, %v585_v52, 0.0  ;;  %v592_v61 = vsel %vm453_vm13, %v586_v53, 0.0 }
 0x2e6   :  { %v589_v57 = vadd.f32 %v588_v56, %v587_v54 }
 0x2e8   :  { %v591_v60 = vadd.f32 %v590_v58, %v589_v57 }
 0x2ea   :  { %v593_v62 = vadd.f32 %v592_v61, %v591_v60 }
 0x2ec   :  { %v594_v55 = vrot.slane %v593_v62, 4 }
 0x2ee   :  { %v595_v63 = vadd.f32 %v594_v55, %v593_v62 }
 0x2f0   :  { %v596_v59 = vrot.slane %v595_v63, 2 }
 0x2f2   :  { %v597_v0 = vadd.f32 %v596_v59, %v595_v63 }
 0x2f4   :  { %v598_v1 = vrot.slane %v597_v0, 1 }
 0x2f6   :  { %v599_v2 = vadd.f32 %v598_v1, %v597_v0 }
 0x2f8   :  { %v600_v3 = vmul.f32 0.03125, %v599_v2 }
 0x2fa   :  { %v601_v4 = vadd.f32 1e-05, %v600_v3 }
 0x2fc   :  { %2290 = vrsqrt.f32 %v601_v4 }
 0x306   :  { %v2291_v10 = vpop.eup %2290 }
 0x307   :  { %v603_v15 = vmul.f32 %v2291_v10, %v579_v46  ;;  %v604_v16 = vmul.f32 %v2291_v10, %v580_v47  ;;  %v605_v17 = vmul.f32 %v2291_v10, %v581_v48  ;;  %v606_v8 = vmul.f32 %v2291_v10, %v582_v49 }
 0x309   :  { %v613_v12 = vmul.f32 %v1922_v11, %v603_v15  ;;  %v614_v18 = vmul.f32 %v1922_v11, %v604_v16  ;;  %v615_v19 = vmul.f32 %v1922_v11, %v605_v17  ;;  %v616_v20 = vmul.f32 %v1922_v11, %v606_v8 }
 0x30b   :  { %v623_v22 = vadd.f32 %v1923_v7, %v613_v12  ;;  %v624_v23 = vadd.f32 %v1923_v7, %v614_v18  ;;  %v625_v24 = vadd.f32 %v1923_v7, %v615_v19  ;;  %v626_v25 = vadd.f32 %v1923_v7, %v616_v20 }
 0x30d   :  { %v627_v26 = vmax.f32 %v623_v22, 0.0  ;;  %v628_v27 = vmax.f32 %v624_v23, 0.0  ;;  %v629_v28 = vmax.f32 %v625_v24, 0.0  ;;  %v630_v29 = vmax.f32 %v626_v25, 0.0 }
 0x30f   :  { %v635_v30 = vcombine.high %v627_v26, %v627_v26  ;;  %v642_v31 = vrot.slane %v627_v26, %v2809_v21  ;;  %v652_v32 = vcombine.high %v628_v27, %v628_v27  ;;  %v659_v33 = vrot.slane %v628_v27, %v2809_v21 }
 0x310   :  { %v669_v35 = vcombine.high %v629_v28, %v629_v28  ;;  %v676_v36 = vrot.slane %v629_v28, %v2809_v21  ;;  %v686_v37 = vcombine.high %v630_v29, %v630_v29  ;;  %v693_v38 = vrot.slane %v630_v29, %v2809_v21 }
 0x311   :  { %v649_v39 = vrot.slane %v635_v30, %v2809_v21  ;;  %v650_v40 = vcombine.high %v642_v31, %v642_v31  ;;  %v2817_v41 = vrot.slane %v652_v32, %v2809_v21  ;;  %v667_v42 = vcombine.high %v659_v33, %v659_v33 }
 0x312   :  { %v683_v43 = vrot.slane %v669_v35, %v2809_v21  ;;  %v684_v44 = vcombine.high %v676_v36, %v676_v36  ;;  %v700_v45 = vrot.slane %v686_v37, %v2809_v21  ;;  %v701_v47 = vcombine.high %v693_v38, %v693_v38 }
 0x313   :  { %v651_v46 = vcombine.high %v649_v39, %v649_v39  ;;  %v720_v48 = vsel %vm719_vm15, %v642_v31, -inf  ;;  %v727_v49 = vsel %vm719_vm15, %v650_v40, -inf  ;;  %v668_v50 = vcombine.high %v2817_v41, %v2817_v41 }
 0x314   :  { %v685_v51 = vcombine.high %v683_v43, %v683_v43  ;;  %v721_v52 = vrot.slane %v720_v48, 4  ;;  %v728_v53 = vrot.slane %v727_v49, 4  ;;  %v702_v54 = vcombine.high %v700_v45, %v700_v45 }
 0x315   :  { %v734_v56 = vsel %vm719_vm15, %v649_v39, -inf  ;;  %v741_v57 = vsel %vm719_vm15, %v651_v46, -inf  ;;  %v748_v58 = vsel %vm719_vm15, %v659_v33, -inf  ;;  %v2829_v59 = vsel %vm719_vm15, %v667_v42, -inf }
 0x316   :  { %v722_v60 = vmax.f32 %v720_v48, %v721_v52  ;;  %v729_v61 = vmax.f32 %v727_v49, %v728_v53  ;;  %v735_v62 = vrot.slane %v734_v56, 4  ;;  %v742_v55 = vrot.slane %v741_v57, 4 }
 0x317   :  { %v749_v63 = vrot.slane %v748_v58, 4  ;;  %v776_v0 = vsel %vm719_vm15, %v676_v36, -inf  ;;  %v783_v1 = vsel %vm719_vm15, %v684_v44, -inf  ;;  %v790_v11 = vsel %vm719_vm15, %v683_v43, -inf }
 0x318   :  { %v723_v2 = vrot.slane %v722_v60, 2  ;;  %v730_v3 = vrot.slane %v729_v61, 2  ;;  %v736_v4 = vmax.f32 %v734_v56, %v735_v62  ;;  %v743_v5 = vmax.f32 %v741_v57, %v742_v55 }
 0x319   :  { %v2833_v6 = vmax.f32 %v748_v58, %v749_v63  ;;  %v777_v9 = vrot.slane %v776_v0, 4  ;;  %v784_v10 = vrot.slane %v783_v1, 4  ;;  %v756_v16 = vrot.slane %v2829_v59, 4 }
 0x31a   :  { %v724_v13 = vmax.f32 %v722_v60, %v723_v2  ;;  %v731_v14 = vmax.f32 %v729_v61, %v730_v3  ;;  %v737_v15 = vrot.slane %v736_v4, 2  ;;  %v744_v17 = vrot.slane %v743_v5, 2 }
 0x31b   :  { %v778_v8 = vmax.f32 %v776_v0, %v777_v9  ;;  %v785_v7 = vmax.f32 %v783_v1, %v784_v10  ;;  %v791_v12 = vrot.slane %v790_v11, 4  ;;  %v751_v20 = vrot.slane %v2833_v6, 2 }
 0x31c   :  { %v725_v18 = vrot.slane %v724_v13, 1  ;;  %v732_v19 = vrot.slane %v731_v14, 1  ;;  %v797_v22 = vsel %vm719_vm15, %v685_v51, -inf  ;;  %v738_v29 = vmax.f32 %v736_v4, %v737_v15 }
 0x31d   :  { %v779_v23 = vrot.slane %v778_v8, 2  ;;  %v786_v24 = vrot.slane %v785_v7, 2  ;;  %v792_v25 = vmax.f32 %v790_v11, %v791_v12  ;;  %v798_v26 = vrot.slane %v797_v22, 4 }
 0x31e   :  { %v2839_v27 = vmax.f32 %v724_v13, %v725_v18  ;;  %v2841_v28 = vmax.f32 %v731_v14, %v732_v19  ;;  %v804_v30 = vsel %vm719_vm15, %v693_v38, -inf  ;;  %v811_v37 = vsel %vm719_vm15, %v701_v47, -inf }
 0x31f   :  { %v780_v31 = vmax.f32 %v778_v8, %v779_v23  ;;  %v787_v32 = vmax.f32 %v785_v7, %v786_v24  ;;  %v793_v33 = vrot.slane %v792_v25, 2  ;;  %v799_v35 = vmax.f32 %v797_v22, %v798_v26 }
 0x320   :  { %v805_v36 = vrot.slane %v804_v30, 4  ;;  %v818_v39 = vsel %vm719_vm15, %v700_v45, -inf  ;;  %v825_v40 = vsel %vm719_vm15, %v702_v54, -inf  ;;  %v812_v49 = vrot.slane %v811_v37, 4 }
 0x321   :  { %v781_v42 = vrot.slane %v780_v31, 1  ;;  %v788_v43 = vrot.slane %v787_v32, 1  ;;  %v794_v44 = vmax.f32 %v792_v25, %v793_v33  ;;  %v800_v46 = vrot.slane %v799_v35, 2 }
 0x322   :  { %v806_v48 = vmax.f32 %v804_v30, %v805_v36  ;;  %v819_v51 = vrot.slane %v818_v39, 4  ;;  %v826_v52 = vrot.slane %v825_v40, 4  ;;  %v739_v38 = vrot.slane %v738_v29, 1 }
 0x323   :  { %v782_v53 = vmax.f32 %v780_v31, %v781_v42  ;;  %v795_v56 = vrot.slane %v794_v44, 1  ;;  %v801_v57 = vmax.f32 %v799_v35, %v800_v46  ;;  %v813_v47 = vmax.f32 %v811_v37, %v812_v49 }
 0x324   :  { %v807_v58 = vrot.slane %v806_v48, 2  ;;  %v820_v60 = vmax.f32 %v818_v39, %v819_v51  ;;  %v827_v45 = vmax.f32 %v825_v40, %v826_v52  ;;  %v789_v54 = vmax.f32 %v787_v32, %v788_v43 }
 0x325   :  { %v796_v61 = vmax.f32 %v794_v44, %v795_v56  ;;  %v802_v62 = vrot.slane %v801_v57, 1  ;;  %v745_v55 = vmax.f32 %v743_v5, %v744_v17  ;;  %v814_v0 = vrot.slane %v813_v47, 2 }
 0x326   :  { %v808_v63 = vmax.f32 %v806_v48, %v807_v58  ;;  %v821_v1 = vrot.slane %v820_v60, 2  ;;  %v828_v2 = vrot.slane %v827_v45, 2  ;;  %v752_v4 = vmax.f32 %v2833_v6, %v751_v20  ;;  %v846_v58 = vld [vmem:[%s3283_s29 + $0x70] sm:$0xff] }
 0x327   :  { %v746_v3 = vrot.slane %v745_v55, 1  ;;  %v757_v9 = vmax.f32 %v2829_v59, %v756_v16  ;;  %v762_v10 = vsel %vm719_vm15, %v2817_v41, -inf  ;;  %v815_v13 = vmax.f32 %v813_v47, %v814_v0  ;;  %v847_v47 = vld [vmem:[%s3283_s29 + $0x78] sm:$0xff] }
 0x328   :  { %v809_v11 = vrot.slane %v808_v63, 1  ;;  %v822_v14 = vmax.f32 %v820_v60, %v821_v1  ;;  %v829_v15 = vmax.f32 %v827_v45, %v828_v2  ;;  %v740_v5 = vmax.f32 %v738_v29, %v739_v38  ;;  %v862_v38 = vld [vmem:[%s3283_s29 + $0xf0] sm:$0xff] }
 0x329   :  { %v753_v17 = vrot.slane %v752_v4, 1  ;;  %v758_v8 = vrot.slane %v757_v9, 2  ;;  %v763_v7 = vrot.slane %v762_v10, 4  ;;  %v816_v12 = vrot.slane %v815_v13, 1 }
 0x32a   :  { %v823_v18 = vrot.slane %v822_v14, 1  ;;  %v830_v19 = vrot.slane %v829_v15, 1  ;;  %v747_v22 = vmax.f32 %v745_v55, %v746_v3  ;;  %v810_v23 = vmax.f32 %v808_v63, %v809_v11 }
 0x32b   :  { %v759_v24 = vmax.f32 %v757_v9, %v758_v8  ;;  %v764_v6 = vmax.f32 %v762_v10, %v763_v7  ;;  %v769_v59 = vsel %vm719_vm15, %v668_v50, -inf  ;;  %v817_v16 = vmax.f32 %v815_v13, %v816_v12 }
 0x32c   :  { %v754_v20 = vmax.f32 %v752_v4, %v753_v17  ;;  %v770_v25 = vrot.slane %v769_v59, 4  ;;  %v803_v26 = vmax.f32 %v801_v57, %v802_v62  ;;  %v831_v31 = vmax.f32 %v829_v15, %v830_v19 }
 0x32d   :  { %v760_v29 = vrot.slane %v759_v24, 1  ;;  %v765_v30 = vrot.slane %v764_v6, 2  ;;  %v890_v32 = vsel %vm889_vm5, %v2841_v28, %v2839_v27  ;;  %v824_v33 = vmax.f32 %v822_v14, %v823_v18 }
 0x32e   :  { %v771_v35 = vmax.f32 %v769_v59, %v770_v25  ;;  %v892_v36 = vsel %vm891_vm6, %v740_v5, %v890_v32  ;;  %v901_v37 = vsel %vm889_vm5, %v789_v54, %v782_v53  ;;  %v863_v53 = vld [vmem:[%s3283_s29 + $0xf8] sm:$0xff]  ;;  %v2139_v2 = vpack.c.bf16 %v847_v47, %v846_v58  ;;  %v1131_v58 = vld [vmem:[%s3255_s9 + $0x50] sm:$0xff] }
 0x32f   :  { %v761_v41 = vmax.f32 %v759_v24, %v760_v29  ;;  %v766_v39 = vmax.f32 %v764_v6, %v765_v30  ;;  %v894_v50 = vsel %vm893_vm7, %v747_v22, %v892_v36  ;;  %v902_v40 = vsel %vm891_vm6, %v796_v61, %v901_v37  ;;  %v1132_v47 = vld [vmem:[%s3255_s9 + $0x58] sm:$0xff] }
 0x330   :  { %v772_v42 = vrot.slane %v771_v35, 2  ;;  %v896_v43 = vsel %vm895_vm8, %v754_v20, %v894_v50  ;;  %v903_v44 = vsel %vm893_vm7, %v803_v26, %v902_v40  ;;  %v906_v46 = vsel %vm899_vm9, %v831_v31, %v824_v33  ;;  %v1121_v40 = vld [vmem:[%s3255_s9] sm:$0xff] }
 0x331   :  { %v898_v27 = vsel %vm897_vm10, %v761_v41, %v896_v43  ;;  %v904_v28 = vsel %vm895_vm8, %v810_v23, %v903_v44  ;;  %v914_v48 = vsel %vm87_vm0, %v906_v46, 0.0  ;;  %v767_v49 = vrot.slane %v766_v39, 1  ;;  %v1123_v43 = vld [vmem:[%s3255_s9 + $0x10] sm:$0xff]  ;;  %v1124_v46 = vld [vmem:[%s3255_s9 + $0x18] sm:$0xff] }
 0x332   :  { %v773_v51 = vmax.f32 %v771_v35, %v772_v42  ;;  %v905_v52 = vsel %vm897_vm10, %v817_v16, %v904_v28  ;;  %v911_v56 = vsel %vm87_vm0, 0.0, %v898_v27  ;;  %v923_v54 = vrot.slane %v914_v48, 1  ;;  %v1122_v42 = vld [vmem:[%s3255_s9 + $0x8] sm:$0xff]  ;;  %v1125_v28 = vld [vmem:[%s3255_s9 + $0x20] sm:$0xff] }
 0x333   :  { %v912_v57 = vsel %vm87_vm0, 0.0, %v905_v52  ;;  %v943_v62 = vrot.slane %v914_v48, 3  ;;  %v2137_v55 = vpack.c.bf16 %v863_v53, %v862_v38  ;;  %v768_v63 = vmax.f32 %v766_v39, %v767_v49  ;;  %v1128_v52 = vld [vmem:[%s3255_s9 + $0x38] sm:$0xff]  ;;  %v1129_v53 = vld [vmem:[%s3255_s9 + $0x40] sm:$0xff] }
 0x334   :  { %v774_v60 = vrot.slane %v773_v51, 1  ;;  %v922_v45 = vrot.slane %v912_v57, 1  ;;  %v942_v61 = vrot.slane %v912_v57, 3  ;;  %v951_v3 = vrot.slane %v911_v56, 4 }
 0x335   :  { %v954_v4 = vrot.slane %v912_v57, 4  ;;  %2138 = vmatprep.subr.bf16.mxu0 %v2137_v55  ;;  %v919_v13 = vrot.slane %v911_v56, 1  ;;  %v939_v14 = vrot.slane %v911_v56, 3  ;;  %v955_v5 = vrot.slane %v914_v48, 4  ;;  %v1136_v55 = vld [vmem:[%s3255_s9 + $0x78] sm:$0xff] }
 0x336   :  { %v775_v0 = vmax.f32 %v773_v51, %v774_v60  ;;  %v924_v1 = vsel %vm108_vm2, %v922_v45, %v923_v54  ;;  %v944_v9 = vsel %vm154_vm3, %v942_v61, %v943_v62  ;;  %2140 = vmatpush3.bf16.msra.mxu0 %v2139_v2  ;;  %v931_v6 = vrot.slane %v911_v56, 2  ;;  %v1127_v51 = vld [vmem:[%s3255_s9 + $0x30] sm:$0xff]  ;;  %v1133_v45 = vld [vmem:[%s3255_s9 + $0x60] sm:$0xff]  ;;  %v1134_v54 = vld [vmem:[%s3255_s9 + $0x68] sm:$0xff] }
 0x337   :  { %v2285_v11 = vpack.i.bf16 %v924_v1, %v944_v9  ;;  %2157 = vmatprep.subr.bf16.mxu0 %v2301_v34  ;;  %v956_v12 = vsel %vm177_vm4, %v954_v4, %v955_v5  ;;  %v934_v20 = vrot.slane %v912_v57, 2  ;;  %v935_v31 = vrot.slane %v914_v48, 2  ;;  %v1126_v48 = vld [vmem:[%s3255_s9 + $0x28] sm:$0xff]  ;;  %v1135_v62 = vld [vmem:[%s3255_s9 + $0x70] sm:$0xff]  ;;  %v1924_v4 = vld [vmem:[%s3256_s8] ss:$0 sm:$0xff] }
 0x338   :  { %v900_v10 = vsel %vm899_vm9, %v775_v0, %v768_v63  ;;  %v2158_v44 = vpack.c.bf16 %v1122_v42, %v1121_v40  ;;  %v2161_v27 = vpack.c.bf16 %v1124_v46, %v1123_v43  ;;  %v2164_v49 = vpack.c.bf16 %v1126_v48, %v1125_v28  ;;  %v1137_v0 = vld [vmem:[%s3255_s9 + $0x80] sm:$0xff]  ;;  %v1138_v1 = vld [vmem:[%s3255_s9 + $0x88] sm:$0xff] }
 0x339   :  { %v913_v15 = vsel %vm87_vm0, %v900_v10, 0.0  ;;  %2286 = vrot.lane.b32.xlu0 %v2285_v11, %s2302_s3  ;;  %v936_v36 = vsel %vm131_vm1, %v934_v20, %v935_v31  ;;  %v2167_v38 = vpack.c.bf16 %v1128_v52, %v1127_v51  ;;  %v2173_v60 = vpack.c.bf16 %v1132_v47, %v1131_v58  ;;  %v1139_v11 = vld [vmem:[%s3255_s9 + $0x90] sm:$0xff] }
 0x33a   :  { %v952_v17 = vrot.slane %v913_v15, 4  ;;  %v920_v8 = vrot.slane %v913_v15, 1  ;;  %v940_v7 = vrot.slane %v913_v15, 3  ;;  %v932_v16 = vrot.slane %v913_v15, 2 }
 0x33b   :  { %v2176_v61 = vpack.c.bf16 %v1134_v54, %v1133_v45  ;;  %v2179_v63 = vpack.c.bf16 %v1136_v55, %v1135_v62  ;;  %v2182_v2 = vpack.c.bf16 %v1138_v1, %v1137_v0  ;;  %v1439_v62 = vld [vmem:[%s3257_s13] sm:$0xff]  ;;  %v1440_v55 = vld [vmem:[%s3257_s13 + $0x8] sm:$0xff]  ;;  %v1442_v1 = vld [vmem:[%s3257_s13 + $0x18] sm:$0xff] }
 0x33c   :  { %v953_v18 = vsel %vm177_vm4, %v951_v3, %v952_v17  ;;  %v921_v19 = vsel %vm108_vm2, %v919_v13, %v920_v8  ;;  %v941_v22 = vsel %vm154_vm3, %v939_v14, %v940_v7  ;;  %v933_v30 = vsel %vm131_vm1, %v931_v6, %v932_v16  ;;  %v1140_v13 = vld [vmem:[%s3255_s9 + $0x98] sm:$0xff] }
 0x33d   :  { %2047 = vmatprep.mubr.msk.f32.mxu1 %vm453_vm13, %v953_v18  ;;  %v2280_v23 = vpack.i.bf16 %v921_v19, %v941_v22  ;;  %v2185_v14 = vpack.c.bf16 %v1140_v13, %v1139_v11  ;;  %v2188_v0 = vpack.c.bf16 %v1440_v55, %v1439_v62  ;;  %v1446_v11 = vld [vmem:[%s3257_s13 + $0x38] sm:$0xff] }
 0x33e   :  { %2048 = vmatmul.mubr.msk.f32.vlgmr.msra.gmra.mrb[12].mxu1 %vm453_vm13, %v956_v12 }
 0x33f   :  { %2281 = vrot.lane.b32.xlu1 %v2280_v23, %s2302_s3  ;;  %2189 = vmatpush1.bf16.msra.mxu1 %v2188_v0 }
 0x340   :  { %2190 = vmatprep.subr.bf16.mxu1 %v2301_v34 }
 0x3ab   :  { %v2287_v24 = vpop.permute.xlu0 %2286 }
 0x3ac   :  { %v2288_v25 = vunpack.i.l.bf16 %v2287_v24  ;;  %v2289_v35 = vunpack.i.h.bf16 %v2287_v24 }
 0x3ae   :  { %v960_v37 = vsel %vm453_vm13, %v936_v36, %v2288_v25  ;;  %v958_v41 = vsel %vm453_vm13, %v912_v57, %v2289_v35 }
 0x3b1   :  { %v2282_v59 = vpop.permute.xlu1 %2281 }
 0x3b2   :  { %v2284_v26 = vunpack.i.h.bf16 %v2282_v59  ;;  %v2283_v29 = vunpack.i.l.bf16 %v2282_v59 }
 0x3b4   :  { %v959_v32 = vsel %vm453_vm13, %v933_v30, %v2283_v29  ;;  %v957_v33 = vsel %vm453_vm13, %v911_v56, %v2284_v26  ;;  %v1130_v56 = vld [vmem:[%s3255_s9 + $0x48] sm:$0xff] }
 0x3b5   :  { %1035 = vmatprep.mubr.f32.mxu0 %v959_v32  ;;  %v2170_v57 = vpack.c.bf16 %v1130_v56, %v1129_v53 }
 0x3b6   :  { %1036 = vmatmul.mubr.f32.vlgmr.msra.gmra.mrb[0].mxu0 %v957_v33 }
 0x3b7   :  { %1040 = vmatprep.mubr.f32.mxu0 %v960_v37  ;;  %2159 = vmatpush1.bf16.msra.mxu0 %v2158_v44 }
 0x3b8   :  { %2160 = vmatprep.subr.bf16.mxu0 %v2301_v34 }
 0x3ba   :  { %1041 = vmatmul.mubr.f32.gmra.mrb[2].mxu0 %v958_v41 }
 0x3bb   :  { %2162 = vmatpush1.bf16.msra.mxu0 %v2161_v27 }
 0x3bc   :  { %2163 = vmatprep.subr.bf16.mxu0 %v2301_v34 }
 0x3bf   :  { %2165 = vmatpush1.bf16.msra.mxu0 %v2164_v49 }
 0x3c0   :  { %2166 = vmatprep.subr.bf16.mxu0 %v2301_v34 }
 0x3c3   :  { %2168 = vmatpush1.bf16.msra.mxu0 %v2167_v38 }
 0x3c4   :  { %2169 = vmatprep.subr.bf16.mxu0 %v2301_v34 }
 0x3c7   :  { %2171 = vmatpush1.bf16.msra.mxu0 %v2170_v57 }
 0x3c8   :  { %2172 = vmatprep.subr.bf16.mxu0 %v2301_v34 }
 0x3cb   :  { %2174 = vmatpush1.bf16.msra.mxu0 %v2173_v60 }
 0x3cc   :  { %2175 = vmatprep.subr.bf16.mxu0 %v2301_v34 }
 0x3cf   :  { %2177 = vmatpush1.bf16.msra.mxu0 %v2176_v61 }
 0x3d0   :  { %2178 = vmatprep.subr.bf16.mxu0 %v2301_v34 }
 0x3d3   :  { %2180 = vmatpush1.bf16.msra.mxu0 %v2179_v63  ;;  %v1441_v63 = vld [vmem:[%s3257_s13 + $0x10] sm:$0xff] }
 0x3d4   :  { %2181 = vmatprep.subr.bf16.mxu0 %v2301_v34 }
 0x3d7   :  { %2183 = vmatpush1.bf16.msra.mxu0 %v2182_v2  ;;  %v2191_v2 = vpack.c.bf16 %v1442_v1, %v1441_v63 }
 0x3d8   :  { %2184 = vmatprep.subr.bf16.mxu0 %v2301_v34 }
 0x3d9   :  { %2192 = vmatpush1.bf16.msra.mxu1 %v2191_v2 }
 0x3da   :  { %2193 = vmatprep.subr.bf16.mxu1 %v2301_v34 }
 0x3db   :  { %2186 = vmatpush1.bf16.msra.mxu0 %v2185_v14  ;;  %v1447_v14 = vld [vmem:[%s3257_s13 + $0x40] sm:$0xff] }
 0x3dc   :  { %2217 = vmatprep.subr.bf16.mxu0 %v2301_v34 }
 0x411   :  { %v2902_v39 = vpop.f32.mrb[12].mxu1 }
 0x412   :  { %v1112_v50 = vpop.f32.mrb[13].mxu1 }
 0x489   :  { %v1988_v3 = vpop.f32.mrb[0].mxu0 }
 0x48a   :  { %v1989_v9 = vpop.f32.mrb[1].mxu0 }
 0x48b   :  { %v1990_v10 = vadd.f32 %v1989_v9, %v1988_v3  ;;  %v1443_v3 = vld [vmem:[%s3257_s13 + $0x20] sm:$0xff] }
 0x48d   :  { %v1038_v15 = vadd.f32 %v1990_v10, %v1924_v4  ;;  %v1991_v5 = vpop.f32.mrb[2].mxu0  ;;  %v1445_v10 = vld [vmem:[%s3257_s13 + $0x30] sm:$0xff] }
 0x48e   :  { %v1992_v17 = vpop.f32.mrb[3].mxu0  ;;  %v2197_v13 = vpack.c.bf16 %v1446_v11, %v1445_v10 }
 0x48f   :  { %v1113_v8 = vadd.f32 %v1112_v50, %v1038_v15  ;;  %v1993_v7 = vadd.f32 %v1992_v17, %v1991_v5  ;;  %v1448_v15 = vld [vmem:[%s3257_s13 + $0x48] sm:$0xff]  ;;  %v1449_v17 = vld [vmem:[%s3257_s13 + $0x50] sm:$0xff] }
 0x490   :  { %v2200_v5 = vpack.c.bf16 %v1448_v15, %v1447_v14 }
 0x491   :  { %v1144_v12 = vrot.slane %v1113_v8, 6  ;;  %v1043_v18 = vadd.f32 %v1993_v7, %v1924_v4  ;;  %v1444_v4 = vld [vmem:[%s3257_s13 + $0x28] sm:$0xff]  ;;  %v1450_v8 = vld [vmem:[%s3257_s13 + $0x58] sm:$0xff] }
 0x492   :  { %v2194_v9 = vpack.c.bf16 %v1444_v4, %v1443_v3  ;;  %v2203_v7 = vpack.c.bf16 %v1450_v8, %v1449_v17 }
 0x493   :  { %v1148_v19 = vsel %vm87_vm0, 0.0, %v1144_v12  ;;  %v1150_v22 = vsel %vm87_vm0, %v1144_v12, 0.0  ;;  %v1118_v23 = vadd.f32 %v2902_v39, %v1043_v18  ;;  %v1451_v12 = vld [vmem:[%s3257_s13 + $0x60] sm:$0xff]  ;;  %v1452_v18 = vld [vmem:[%s3257_s13 + $0x68] sm:$0xff] }
 0x494   :  { %v1192_v24 = vrot.slane %v1148_v19, 4  ;;  %v1193_v6 = vrot.slane %v1150_v22, 4  ;;  %v1168_v59 = vrot.slane %v1148_v19, 2  ;;  %v1169_v16 = vrot.slane %v1150_v22, 2  ;;  %2195 = vmatpush1.bf16.msra.mxu1 %v2194_v9 }
 0x495   :  { %v1145_v20 = vrot.slane %v1118_v23, 6  ;;  %v1156_v25 = vrot.slane %v1148_v19, 1  ;;  %v1157_v26 = vrot.slane %v1150_v22, 1  ;;  %v1180_v31 = vrot.slane %v1148_v19, 3  ;;  %2196 = vmatprep.subr.bf16.mxu1 %v2301_v34  ;;  %v1927_v23 = vld [vmem:[%s3258_s10] ss:$0 sm:$0xff] }
 0x496   :  { %v1194_v29 = vsel %vm177_vm4, %v1192_v24, %v1193_v6  ;;  %v1170_v30 = vsel %vm131_vm1, %v1168_v59, %v1169_v16  ;;  %v1181_v36 = vrot.slane %v1150_v22, 3 }
 0x497   :  { %v1149_v32 = vsel %vm87_vm0, 0.0, %v1145_v20  ;;  %v1151_v33 = vsel %vm87_vm0, %v1145_v20, 0.0  ;;  %1928 = vmatprep.mubr.msk.f32.mxu0 %vm448_vm12, %v1194_v29  ;;  %1174 = vrot.lane.b32.xlu0 %v1170_v30, %s2302_s3  ;;  %v1158_v35 = vsel %vm108_vm2, %v1156_v25, %v1157_v26 }
 0x498   :  { %1162 = vrot.lane.b32.xlu1 %v1158_v35, %s2303_s24  ;;  %v1159_v37 = vrot.slane %v1149_v32, 1  ;;  %v1160_v41 = vrot.slane %v1151_v33, 1  ;;  %v1183_v50 = vrot.slane %v1149_v32, 3  ;;  %v1184_v40 = vrot.slane %v1151_v33, 3  ;;  %2198 = vmatpush1.bf16.msra.mxu1 %v2197_v13 }
 0x499   :  { %v1182_v42 = vsel %vm154_vm3, %v1180_v31, %v1181_v36  ;;  %v1171_v43 = vrot.slane %v1149_v32, 2  ;;  %v1172_v44 = vrot.slane %v1151_v33, 2  ;;  %v1195_v51 = vrot.slane %v1149_v32, 4  ;;  %2199 = vmatprep.subr.bf16.mxu1 %v2301_v34 }
 0x49a   :  { %v1161_v39 = vsel %vm108_vm2, %v1159_v37, %v1160_v41  ;;  %v1185_v46 = vsel %vm154_vm3, %v1183_v50, %v1184_v40  ;;  %v1196_v52 = vrot.slane %v1151_v33, 4  ;;  %vm1382_vm2 = vcmask 254976  }
 0x49b   :  { %1164 = vrot.lane.b32.xlu0 %v1161_v39, %s2303_s24  ;;  %v1173_v27 = vsel %vm131_vm1, %v1171_v43, %v1172_v44  ;;  %vm1905_vm3 = vcmask 1024  }
 0x49c   :  { %1186 = vrot.lane.b32.xlu1 %v1182_v42, %s2304_s27  ;;  %v1197_v58 = vsel %vm177_vm4, %v1195_v51, %v1196_v52  ;;  %2201 = vmatpush1.bf16.msra.mxu1 %v2200_v5 }
 0x49d   :  { %2202 = vmatprep.subr.bf16.mxu1 %v2301_v34 }
 0x49f   :  { %1188 = vrot.lane.b32.xlu0 %v1185_v46, %s2304_s27 }
 0x4a0   :  { %1176 = vrot.lane.b32.xlu1 %v1173_v27, %s2302_s3  ;;  %2204 = vmatpush1.bf16.msra.mxu1 %v2203_v7 }
 0x4a1   :  { %2205 = vmatprep.subr.bf16.mxu1 %v2301_v34 }
 0x509   :  { %v1175_v28 = vpop.permute.xlu0 %1174 }
 0x50a   :  { %v1163_v48 = vpop.permute.xlu1 %1162 }
 0x50b   :  { %v1198_v49 = vsel %vm448_vm12, %v1148_v19, %v1163_v48  ;;  %v2206_v19 = vpack.c.bf16 %v1452_v18, %v1451_v12 }
 0x50c   :  { %v1200_v53 = vsel %vm453_vm13, %v1198_v49, %v1175_v28 }
 0x50d   :  { %v1165_v38 = vpop.permute.xlu0 %1164  ;;  %2207 = vmatpush1.bf16.msra.mxu1 %v2206_v19 }
 0x50e   :  { %v1187_v56 = vpop.permute.xlu1 %1186  ;;  %v1199_v60 = vsel %vm448_vm12, %v1149_v32, %v1165_v38  ;;  %2208 = vmatprep.subr.bf16.mxu1 %v2301_v34 }
 0x50f   :  { %v1202_v57 = vsel %vm458_vm14, %v1200_v53, %v1187_v56  ;;  %v1930_v56 = vld [vmem:[%s3259_s11] ss:$0 sm:$0xff] }
 0x510   :  { %1279 = vmatmul.mubr.f32.vlgmr.msra.gmra.mrb[4].mxu0 %v1202_v57 }
 0x511   :  { %1929 = vmatprep.mubr.msk.f32.mxu0 %vm448_vm12, %v1197_v58  ;;  %v1189_v47 = vpop.permute.xlu0 %1188 }
 0x512   :  { %v1177_v45 = vpop.permute.xlu1 %1176 }
 0x513   :  { %v1201_v54 = vsel %vm453_vm13, %v1199_v60, %v1177_v45 }
 0x514   :  { %v1203_v61 = vsel %vm458_vm14, %v1201_v54, %v1189_v47  ;;  %v1931_v47 = vld [vmem:[%s3260_s12] ss:$0 sm:$0xff] }
 0x515   :  { %1284 = vmatmul.mubr.f32.gmra.mrb[6].mxu0 %v1203_v61 }
 0x5e3   :  { %v1280_v22 = vpop.f32.mrb[4].mxu0 }
 0x5e4   :  { %v1282_v24 = vpop.f32.mrb[5].mxu0  ;;  %v1281_v6 = vadd.f32 %v1927_v23, %v1280_v22 }
 0x5e6   :  { %v1291_v25 = vsel %vm448_vm12, %v1281_v6, 0.0 }
 0x5e8   :  { %v1285_v59 = vpop.f32.mrb[6].mxu0 }
 0x5e9   :  { %v1286_v16 = vadd.f32 %v1927_v23, %v1285_v59  ;;  %v1287_v20 = vpop.f32.mrb[7].mxu0 }
 0x5eb   :  { %v1292_v26 = vsel %vm448_vm12, %v1286_v16, 0.0 }
 0x5ec   :  { %v1293_v29 = vadd.f32 %v1292_v26, %v1291_v25 }
 0x5ee   :  { %v1294_v30 = vrot.slane %v1293_v29, 4 }
 0x5f0   :  { %v1295_v31 = vadd.f32 %v1294_v30, %v1293_v29 }
 0x5f2   :  { %v1296_v32 = vrot.slane %v1295_v31, 2 }
 0x5f4   :  { %v1297_v33 = vadd.f32 %v1296_v32, %v1295_v31 }
 0x5f6   :  { %v1298_v35 = vrot.slane %v1297_v33, 1 }
 0x5f8   :  { %v1299_v36 = vadd.f32 %v1298_v35, %v1297_v33 }
 0x5fa   :  { %v1301_v37 = vmul.f32 0.0625, %v1299_v36 }
 0x5fc   :  { %v1302_v41 = vsub.f32 %v1281_v6, %v1301_v37  ;;  %v1303_v39 = vsub.f32 %v1286_v16, %v1301_v37 }
 0x5fe   :  { %v1304_v50 = vmul.f32 %v1302_v41, %v1302_v41  ;;  %v1305_v40 = vmul.f32 %v1303_v39, %v1303_v39 }
 0x600   :  { %v1306_v42 = vsel %vm448_vm12, %v1304_v50, 0.0  ;;  %v1307_v43 = vsel %vm448_vm12, %v1305_v40, 0.0 }
 0x601   :  { %v1308_v44 = vadd.f32 %v1307_v43, %v1306_v42 }
 0x603   :  { %v1309_v46 = vrot.slane %v1308_v44, 4 }
 0x605   :  { %v1310_v27 = vadd.f32 %v1309_v46, %v1308_v44 }
 0x607   :  { %v1311_v28 = vrot.slane %v1310_v27, 2 }
 0x609   :  { %v1312_v48 = vadd.f32 %v1311_v28, %v1310_v27 }
 0x60b   :  { %v1313_v49 = vrot.slane %v1312_v48, 1 }
 0x60d   :  { %v1314_v51 = vadd.f32 %v1313_v49, %v1312_v48 }
 0x60f   :  { %v1315_v52 = vmul.f32 0.0625, %v1314_v51 }
 0x611   :  { %v1316_v38 = vadd.f32 1e-05, %v1315_v52  ;;  %v1453_v52 = vld [vmem:[%s3257_s13 + $0x70] sm:$0xff] }
 0x613   :  { %2292 = vrsqrt.f32 %v1316_v38  ;;  %v1454_v38 = vld [vmem:[%s3257_s13 + $0x78] sm:$0xff] }
 0x61d   :  { %v2293_v53 = vpop.eup %2292 }
 0x61e   :  { %v1318_v57 = vmul.f32 %v2293_v53, %v1302_v41  ;;  %v1319_v58 = vmul.f32 %v2293_v53, %v1303_v39 }
 0x620   :  { %v1326_v60 = vmul.f32 %v1930_v56, %v1318_v57  ;;  %v1327_v45 = vmul.f32 %v1930_v56, %v1319_v58 }
 0x622   :  { %v1334_v54 = vadd.f32 %v1931_v47, %v1326_v60  ;;  %v1335_v61 = vadd.f32 %v1931_v47, %v1327_v45 }
 0x624   :  { %v1336_v62 = vmax.f32 %v1334_v54, 0.0  ;;  %v1337_v55 = vmax.f32 %v1335_v61, 0.0 }
 0x626   :  { %v1340_v63 = vcombine.high %v1336_v62, %v1336_v62  ;;  %v1347_v0 = vrot.slane %v1336_v62, %v2809_v21  ;;  %v1357_v1 = vcombine.high %v1337_v55, %v1337_v55  ;;  %v1364_v2 = vrot.slane %v1337_v55, %v2809_v21 }
 0x628   :  { %v1354_v3 = vrot.slane %v1340_v63, %v2809_v21  ;;  %v1355_v4 = vcombine.high %v1347_v0, %v1347_v0  ;;  %v1371_v9 = vrot.slane %v1357_v1, %v2809_v21  ;;  %v1372_v10 = vcombine.high %v1364_v2, %v1364_v2  ;;  %v1456_v1 = vld [vmem:[%s3257_s13 + $0x88] sm:$0xff] }
 0x629   :  { %v1383_v11 = vsel %vm1382_vm2, %v1347_v0, -inf  ;;  %v1411_v13 = vsel %vm1382_vm2, %v1364_v2, -inf  ;;  %v2209_v63 = vpack.c.bf16 %v1454_v38, %v1453_v52  ;;  %v1455_v0 = vld [vmem:[%s3257_s13 + $0x80] sm:$0xff]  ;;  %v1606_v38 = vld [vmem:[%s3261_s15 + $0x28] sm:$0xff] }
 0x62a   :  { %v1356_v14 = vcombine.high %v1354_v3, %v1354_v3  ;;  %v1373_v15 = vcombine.high %v1371_v9, %v1371_v9  ;;  %v1384_v5 = vrot.slane %v1383_v11, 4  ;;  %v1390_v17 = vsel %vm1382_vm2, %v1355_v4, -inf  ;;  %v1605_v52 = vld [vmem:[%s3261_s15 + $0x20] sm:$0xff] }
 0x62b   :  { %v1391_v8 = vrot.slane %v1390_v17, 4  ;;  %v1397_v7 = vsel %vm1382_vm2, %v1354_v3, -inf  ;;  %v1412_v12 = vrot.slane %v1411_v13, 4  ;;  %v1418_v18 = vsel %vm1382_vm2, %v1372_v10, -inf  ;;  %2210 = vmatpush1.bf16.msra.mxu1 %v2209_v63  ;;  %v1614_v63 = vld [vmem:[%s3261_s15 + $0x68] sm:$0xff] }
 0x62c   :  { %v1385_v19 = vmax.f32 %v1383_v11, %v1384_v5  ;;  %v1398_v22 = vrot.slane %v1397_v7, 4  ;;  %v1404_v21 = vsel %vm1382_vm2, %v1356_v14, -inf  ;;  %v1419_v23 = vrot.slane %v1418_v18, 4  ;;  %2211 = vmatprep.subr.bf16.mxu1 %v2301_v34 }
 0x62d   :  { %v1392_v24 = vmax.f32 %v1390_v17, %v1391_v8  ;;  %v1405_v6 = vrot.slane %v1404_v21, 4  ;;  %v1413_v59 = vmax.f32 %v1411_v13, %v1412_v12  ;;  %v1425_v16 = vsel %vm1382_vm2, %v1371_v9, -inf  ;;  %v1457_v8 = vld [vmem:[%s3257_s13 + $0x90] sm:$0xff] }
 0x62e   :  { %v1386_v20 = vrot.slane %v1385_v19, 2  ;;  %v1399_v25 = vmax.f32 %v1397_v7, %v1398_v22  ;;  %v1420_v26 = vmax.f32 %v1418_v18, %v1419_v23  ;;  %v1426_v29 = vrot.slane %v1425_v16, 4  ;;  %v1458_v7 = vld [vmem:[%s3257_s13 + $0x98] sm:$0xff] }
 0x62f   :  { %v1393_v30 = vrot.slane %v1392_v24, 2  ;;  %v1406_v31 = vmax.f32 %v1404_v21, %v1405_v6  ;;  %v1414_v32 = vrot.slane %v1413_v59, 2  ;;  %v1432_v33 = vsel %vm1382_vm2, %v1373_v15, -inf }
 0x630   :  { %v1387_v35 = vmax.f32 %v1385_v19, %v1386_v20  ;;  %v1400_v36 = vrot.slane %v1399_v25, 2  ;;  %v1421_v37 = vrot.slane %v1420_v26, 2  ;;  %v1427_v41 = vmax.f32 %v1425_v16, %v1426_v29 }
 0x631   :  { %v1394_v39 = vmax.f32 %v1392_v24, %v1393_v30  ;;  %v1415_v50 = vmax.f32 %v1413_v59, %v1414_v32  ;;  %v1433_v40 = vrot.slane %v1432_v33, 4  ;;  %v1407_v42 = vrot.slane %v1406_v31, 2 }
 0x632   :  { %v1388_v43 = vrot.slane %v1387_v35, 1  ;;  %v1401_v44 = vmax.f32 %v1399_v25, %v1400_v36  ;;  %v1422_v46 = vmax.f32 %v1420_v26, %v1421_v37  ;;  %v1428_v27 = vrot.slane %v1427_v41, 2 }
 0x633   :  { %v1395_v28 = vrot.slane %v1394_v39, 1  ;;  %v1416_v48 = vrot.slane %v1415_v50, 1  ;;  %v1434_v49 = vmax.f32 %v1432_v33, %v1433_v40  ;;  %v1408_v51 = vmax.f32 %v1406_v31, %v1407_v42 }
 0x634   :  { %v1389_v53 = vmax.f32 %v1387_v35, %v1388_v43  ;;  %v1423_v56 = vrot.slane %v1422_v46, 1  ;;  %v1429_v57 = vmax.f32 %v1427_v41, %v1428_v27  ;;  %v1402_v58 = vrot.slane %v1401_v44, 1  ;;  %v1602_v27 = vld [vmem:[%s3261_s15 + $0x8] sm:$0xff] }
 0x635   :  { %v1417_v47 = vmax.f32 %v1415_v50, %v1416_v48  ;;  %v1435_v60 = vrot.slane %v1434_v49, 2  ;;  %v1396_v45 = vmax.f32 %v1394_v39, %v1395_v28  ;;  %v1409_v54 = vrot.slane %v1408_v51, 1  ;;  %v1603_v28 = vld [vmem:[%s3261_s15 + $0x10] sm:$0xff] }
 0x636   :  { %v1424_v61 = vmax.f32 %v1422_v46, %v1423_v56  ;;  %v1430_v62 = vrot.slane %v1429_v57, 1  ;;  %v1403_v55 = vmax.f32 %v1401_v44, %v1402_v58  ;;  %v2212_v13 = vpack.c.bf16 %v1456_v1, %v1455_v0  ;;  %v1601_v46 = vld [vmem:[%s3261_s15] sm:$0xff]  ;;  %v1607_v56 = vld [vmem:[%s3261_s15 + $0x30] sm:$0xff] }
 0x637   :  { %v1436_v2 = vmax.f32 %v1434_v49, %v1435_v60  ;;  %v1410_v3 = vmax.f32 %v1408_v51, %v1409_v54  ;;  %v1468_v4 = vsel %vm889_vm5, %v1396_v45, %v1389_v53  ;;  %v2215_v22 = vpack.c.bf16 %v1458_v7, %v1457_v8  ;;  %v1604_v49 = vld [vmem:[%s3261_s15 + $0x18] sm:$0xff]  ;;  %v1610_v60 = vld [vmem:[%s3261_s15 + $0x48] sm:$0xff]  ;;  %v1611_v54 = vld [vmem:[%s3261_s15 + $0x50] sm:$0xff] }
 0x638   :  { %v1431_v9 = vmax.f32 %v1429_v57, %v1430_v62  ;;  %v1471_v10 = vsel %vm889_vm5, %v1424_v61, %v1417_v47  ;;  %v1469_v11 = vsel %vm891_vm6, %v1403_v55, %v1468_v4  ;;  %2213 = vmatpush1.bf16.msra.mxu1 %v2212_v13  ;;  %v2218_v48 = vpack.c.bf16 %v1602_v27, %v1601_v46  ;;  %v1608_v57 = vld [vmem:[%s3261_s15 + $0x38] sm:$0xff]  ;;  %v1609_v47 = vld [vmem:[%s3261_s15 + $0x40] sm:$0xff]  ;;  %v1615_v1 = vld [vmem:[%s3261_s15 + $0x70] sm:$0xff] }
 0x639   :  { %v1437_v14 = vrot.slane %v1436_v2, 1  ;;  %v1470_v15 = vsel %vm893_vm7, %v1410_v3, %v1469_v11  ;;  %2214 = vmatprep.subr.bf16.mxu1 %v2301_v34  ;;  %v2221_v51 = vpack.c.bf16 %v1604_v49, %v1603_v28  ;;  %v2224_v53 = vpack.c.bf16 %v1606_v38, %v1605_v52  ;;  %v1612_v61 = vld [vmem:[%s3261_s15 + $0x58] sm:$0xff]  ;;  %v1613_v55 = vld [vmem:[%s3261_s15 + $0x60] sm:$0xff]  ;;  %v1618_v11 = vld [vmem:[%s3261_s15 + $0x88] sm:$0xff] }
 0x63a   :  { %v1472_v5 = vsel %vm891_vm6, %v1431_v9, %v1471_v10  ;;  %v1476_v17 = vsel %vm87_vm0, 0.0, %v1470_v15  ;;  %2219 = vmatpush1.bf16.msra.mxu0 %v2218_v48  ;;  %v2227_v58 = vpack.c.bf16 %v1608_v57, %v1607_v56  ;;  %v2230_v45 = vpack.c.bf16 %v1610_v60, %v1609_v47  ;;  %v1932_v4 = vld [vmem:[%s3262_s14] ss:$0 sm:$0xff]  ;;  %v1619_v8 = vld [vmem:[%s3261_s15 + $0x90] sm:$0xff]  ;;  %v1620_v7 = vld [vmem:[%s3261_s15 + $0x98] sm:$0xff] }
 0x63b   :  { %v1438_v12 = vmax.f32 %v1436_v2, %v1437_v14  ;;  %v1478_v18 = vsel %vm131_vm1, %v1476_v17, 0.0  ;;  %2220 = vmatprep.subr.bf16.mxu0 %v2301_v34  ;;  %v2233_v62 = vpack.c.bf16 %v1612_v61, %v1611_v54  ;;  %v2236_v0 = vpack.c.bf16 %v1614_v63, %v1613_v55  ;;  %v1616_v2 = vld [vmem:[%s3261_s15 + $0x78] sm:$0xff]  ;;  %v1617_v10 = vld [vmem:[%s3261_s15 + $0x80] sm:$0xff]  ;;  %v1820_v27 = vld [vmem:[%s3263_s19 + $0x8] sm:$0xff] }
 0x63c   :  { %v1482_v19 = vrot.slane %v1478_v18, 1  ;;  %v1506_v24 = vrot.slane %v1478_v18, 4  ;;  %v1490_v20 = vrot.slane %v1478_v18, 2  ;;  %2216 = vmatpush1.bf16.msra.mxu1 %v2215_v22  ;;  %v1498_v29 = vrot.slane %v1478_v18, 3  ;;  %v1819_v46 = vld [vmem:[%s3263_s19] sm:$0xff]  ;;  %v1821_v28 = vld [vmem:[%s3263_s19 + $0x10] sm:$0xff] }
 0x63d   :  { %v1473_v21 = vsel %vm893_vm7, %v1438_v12, %v1472_v5  ;;  %2247 = vmatprep.subr.bf16.mxu1 %v2301_v34  ;;  %v2239_v3 = vpack.c.bf16 %v1616_v2, %v1615_v1  ;;  %v2242_v15 = vpack.c.bf16 %v1618_v11, %v1617_v10  ;;  %v2307_v48 = vmov 0.0  }
 0x63e   :  { %v1477_v23 = vsel %vm87_vm0, 0.0, %v1473_v21  ;;  %1484 = vrot.lane.b32.xlu1 %v1482_v19, %s2303_s24  ;;  %2222 = vmatpush1.bf16.msra.mxu0 %v2221_v51  ;;  %v2245_v19 = vpack.c.bf16 %v1620_v7, %v1619_v8  ;;  %v2248_v49 = vpack.c.bf16 %v1820_v27, %v1819_v46  ;;  %v1822_v51 = vld [vmem:[%s3263_s19 + $0x18] sm:$0xff]  ;;  %v26_v38 = vstv %s3264_s20 }
 0x63f   :  { %v1479_v6 = vsel %vm131_vm1, %v1477_v23, 0.0  ;;  %2223 = vmatprep.subr.bf16.mxu0 %v2301_v34  ;;  %v2251_v52 = vpack.c.bf16 %v1822_v51, %v1821_v28  ;;  %27 = vst [vmem:[#allocation2] sm:$0x1] %v26_v38 }
 0x640   :  { %v1483_v59 = vrot.slane %v1479_v6, 1  ;;  %v1507_v16 = vrot.slane %v1479_v6, 4  ;;  %v1491_v26 = vrot.slane %v1479_v6, 2  ;;  %v1499_v30 = vrot.slane %v1479_v6, 3 }
 0x642   :  { %1486 = vrot.lane.b32.xlu0 %v1483_v59, %s2303_s24  ;;  %v1934_v25 = vcombine.low %v1506_v24, %v1507_v16  ;;  %1492 = vrot.lane.b32.xlu1 %v1490_v20, %s2302_s3 }
 0x643   :  { %2225 = vmatpush1.bf16.msra.mxu0 %v2224_v53  ;;  %v1936_v53 = vld [vmem:[%s3265_s16] ss:$0 sm:$0xff] }
 0x644   :  { %1935 = vmatprep.mubr.msk.f32.mxu1 %vm448_vm12, %v1934_v25  ;;  %2226 = vmatprep.subr.bf16.mxu0 %v2301_v34 }
 0x646   :  { %1494 = vrot.lane.b32.xlu0 %v1491_v26, %s2302_s3  ;;  %1500 = vrot.lane.b32.xlu1 %v1498_v29, %s2304_s27  ;;  %v1942_v28 = vld [vmem:[#allocation2] ss:$0 sm:$0xff] }
 0x647   :  { %2228 = vmatpush1.bf16.msra.mxu0 %v2227_v58 }
 0x648   :  { %2229 = vmatprep.subr.bf16.mxu0 %v2301_v34 }
 0x64a   :  { %1502 = vrot.lane.b32.xlu0 %v1499_v30, %s2304_s27 }
 0x64b   :  { %2231 = vmatpush1.bf16.msra.mxu0 %v2230_v45 }
 0x64c   :  { %2232 = vmatprep.subr.bf16.mxu0 %v2301_v34 }
 0x64f   :  { %2234 = vmatpush1.bf16.msra.mxu0 %v2233_v62 }
 0x650   :  { %2235 = vmatprep.subr.bf16.mxu0 %v2301_v34 }
 0x653   :  { %2237 = vmatpush1.bf16.msra.mxu0 %v2236_v0 }
 0x654   :  { %2238 = vmatprep.subr.bf16.mxu0 %v2301_v34 }
 0x657   :  { %2240 = vmatpush1.bf16.msra.mxu0 %v2239_v3 }
 0x658   :  { %2241 = vmatprep.subr.bf16.mxu0 %v2301_v34 }
 0x65b   :  { %2243 = vmatpush1.bf16.msra.mxu0 %v2242_v15 }
 0x65c   :  { %2244 = vmatprep.subr.bf16.mxu0 %v2301_v34 }
 0x65f   :  { %2246 = vmatpush1.bf16.msra.mxu0 %v2245_v19 }
 0x6b0   :  { %v1485_v31 = vpop.permute.xlu1 %1484 }
 0x6b1   :  { %v1508_v37 = vsel %vm448_vm12, %v1478_v18, %v1485_v31 }
 0x6b4   :  { %v1487_v32 = vpop.permute.xlu0 %1486  ;;  %v1493_v33 = vpop.permute.xlu1 %1492 }
 0x6b5   :  { %v1510_v41 = vsel %vm453_vm13, %v1508_v37, %v1493_v33  ;;  %v1509_v39 = vsel %vm448_vm12, %v1479_v6, %v1487_v32 }
 0x6b8   :  { %v1495_v35 = vpop.permute.xlu0 %1494  ;;  %v1501_v36 = vpop.permute.xlu1 %1500 }
 0x6b9   :  { %v1512_v50 = vsel %vm458_vm14, %v1510_v41, %v1501_v36  ;;  %v1511_v40 = vsel %vm453_vm13, %v1509_v39, %v1495_v35 }
 0x6bc   :  { %v1503_v42 = vpop.permute.xlu0 %1502 }
 0x6bd   :  { %v1513_v43 = vsel %vm458_vm14, %v1511_v40, %v1503_v42 }
 0x6be   :  { %v1933_v44 = vcombine.low %v1512_v50, %v1513_v43 }
 0x6c0   :  { %1594 = vmatmul.mubr.f32.vlgmr.msra.gmra.mrb[14].mxu1 %v1933_v44 }
 0x6c1   :  { %2249 = vmatpush3.bf16.msra.mxu1 %v2248_v49 }
 0x6c2   :  { %2250 = vmatprep.subr.bf16.mxu1 %v2301_v34 }
 0x6c5   :  { %2252 = vmatpush3.bf16.msra.mxu1 %v2251_v52 }
 0x793   :  { %v1595_v9 = vpop.f32.mrb[14].mxu1 }
 0x794   :  { %v1596_v13 = vadd.f32 %v1932_v4, %v1595_v9  ;;  %v1597_v14 = vpop.f32.mrb[15].mxu1 }
 0x796   :  { %v1600_v5 = vcombine.high %v1596_v13, %v1596_v13  ;;  %v1622_v17 = vrot.slane %v1596_v13, 6 }
 0x798   :  { %v1623_v12 = vrot.slane %v1600_v5, 6  ;;  %v1626_v18 = vsel %vm87_vm0, 0.0, %v1622_v17 }
 0x799   :  { %v1628_v22 = vsel %vm131_vm1, %v1626_v18, 0.0 }
 0x79a   :  { %v1627_v21 = vsel %vm87_vm0, 0.0, %v1623_v12  ;;  %v1632_v23 = vrot.slane %v1628_v22, 1  ;;  %v1656_v59 = vrot.slane %v1628_v22, 4  ;;  %v1640_v20 = vrot.slane %v1628_v22, 2 }
 0x79b   :  { %v1629_v24 = vsel %vm131_vm1, %v1627_v21, 0.0  ;;  %v1648_v29 = vrot.slane %v1628_v22, 3  ;;  %vm2306_vm0 = vmmov 0   ;;  %vm1754_vm1 = vcmask 257024  }
 0x79c   :  { %1634 = vrot.lane.b32.xlu1 %v1632_v23, %s2303_s24  ;;  %v1633_v6 = vrot.slane %v1629_v24, 1  ;;  %v1657_v16 = vrot.slane %v1629_v24, 4  ;;  %v1641_v26 = vrot.slane %v1629_v24, 2  ;;  %v1649_v30 = vrot.slane %v1629_v24, 3  ;;  %2058 = vmatprep.mubr.msk.f32.mxu1 %vm2306_vm0, %v2307_v48 }
 0x79e   :  { %1636 = vrot.lane.b32.xlu0 %v1633_v6, %s2303_s24  ;;  %v1938_v25 = vcombine.low %v1656_v59, %v1657_v16 }
 0x7a0   :  { %1642 = vrot.lane.b32.xlu1 %v1640_v20, %s2302_s3  ;;  %1939 = vmatprep.mubr.msk.f32.mxu0 %vm448_vm12, %v1938_v25 }
 0x7a2   :  { %1644 = vrot.lane.b32.xlu0 %v1641_v26, %s2302_s3 }
 0x7a4   :  { %1650 = vrot.lane.b32.xlu1 %v1648_v29, %s2304_s27 }
 0x7a6   :  { %1652 = vrot.lane.b32.xlu0 %v1649_v30, %s2304_s27 }
 0x80e   :  { %v1635_v31 = vpop.permute.xlu1 %1634 }
 0x80f   :  { %v1658_v37 = vsel %vm448_vm12, %v1628_v22, %v1635_v31  ;;  %v1940_v22 = vld [vmem:[%s3266_s17] ss:$0 sm:$0xff] }
 0x810   :  { %v1637_v32 = vpop.permute.xlu0 %1636 }
 0x811   :  { %v1659_v41 = vsel %vm448_vm12, %v1629_v24, %v1637_v32  ;;  %v1941_v24 = vld [vmem:[%s3267_s18] ss:$0 sm:$0xff] }
 0x812   :  { %v1643_v33 = vpop.permute.xlu1 %1642 }
 0x813   :  { %v1660_v39 = vsel %vm453_vm13, %v1658_v37, %v1643_v33 }
 0x814   :  { %v1645_v35 = vpop.permute.xlu0 %1644 }
 0x815   :  { %v1661_v50 = vsel %vm453_vm13, %v1659_v41, %v1645_v35 }
 0x816   :  { %v1651_v36 = vpop.permute.xlu1 %1650 }
 0x817   :  { %v1662_v42 = vsel %vm458_vm14, %v1660_v39, %v1651_v36 }
 0x818   :  { %v1653_v40 = vpop.permute.xlu0 %1652 }
 0x819   :  { %v1663_v43 = vsel %vm458_vm14, %v1661_v50, %v1653_v40 }
 0x81a   :  { %v1937_v44 = vcombine.low %v1662_v42, %v1663_v43 }
 0x81c   :  { %1744 = vmatmul.mubr.f32.vlgmr.msra.gmra.mrb[8].mxu0 %v1937_v44 }
 0x8ef   :  { %v1745_v56 = vpop.f32.mrb[8].mxu0 }
 0x8f0   :  { %v1746_v57 = vadd.f32 %v1936_v53, %v1745_v56  ;;  %v1747_v58 = vpop.f32.mrb[9].mxu0 }
 0x8f2   :  { %v1750_v47 = vcombine.high %v1746_v57, %v1746_v57  ;;  %v1755_v60 = vsel %vm1754_vm1, %v1746_v57, 0.0 }
 0x8f4   :  { %v1756_v45 = vsel %vm1754_vm1, %v1750_v47, 0.0 }
 0x8f5   :  { %v1757_v34 = vadd.f32 %v1756_v45, %v1755_v60 }
 0x8f7   :  { %v1758_v54 = vrot.slane %v1757_v34, 4 }
 0x8f9   :  { %v1759_v61 = vadd.f32 %v1758_v54, %v1757_v34 }
 0x8fb   :  { %v1760_v62 = vrot.slane %v1759_v61, 2 }
 0x8fd   :  { %v1761_v55 = vadd.f32 %v1760_v62, %v1759_v61 }
 0x8ff   :  { %v1762_v63 = vrot.slane %v1761_v55, 1 }
 0x901   :  { %v1763_v0 = vadd.f32 %v1762_v63, %v1761_v55 }
 0x903   :  { %v1765_v1 = vmul.f32 0.125, %v1763_v0 }
 0x905   :  { %v1766_v2 = vsub.f32 %v1746_v57, %v1765_v1  ;;  %v1767_v3 = vsub.f32 %v1750_v47, %v1765_v1 }
 0x907   :  { %v1768_v4 = vmul.f32 %v1766_v2, %v1766_v2  ;;  %v1769_v9 = vmul.f32 %v1767_v3, %v1767_v3 }
 0x909   :  { %v1770_v10 = vsel %vm1754_vm1, %v1768_v4, 0.0  ;;  %v1771_v11 = vsel %vm1754_vm1, %v1769_v9, 0.0 }
 0x90a   :  { %v1772_v13 = vadd.f32 %v1771_v11, %v1770_v10 }
 0x90c   :  { %v1773_v14 = vrot.slane %v1772_v13, 4 }
 0x90e   :  { %v1774_v15 = vadd.f32 %v1773_v14, %v1772_v13 }
 0x910   :  { %v1775_v5 = vrot.slane %v1774_v15, 2 }
 0x912   :  { %v1776_v17 = vadd.f32 %v1775_v5, %v1774_v15 }
 0x914   :  { %v1777_v8 = vrot.slane %v1776_v17, 1 }
 0x916   :  { %v1778_v7 = vadd.f32 %v1777_v8, %v1776_v17 }
 0x918   :  { %v1779_v12 = vmul.f32 0.125, %v1778_v7 }
 0x91a   :  { %v1780_v18 = vadd.f32 1e-05, %v1779_v12 }
 0x91c   :  { %2294 = vrsqrt.f32 %v1780_v18 }
 0x926   :  { %v2295_v19 = vpop.eup %2294 }
 0x927   :  { %v1782_v21 = vmul.f32 %v2295_v19, %v1766_v2  ;;  %v1783_v23 = vmul.f32 %v2295_v19, %v1767_v3 }
 0x929   :  { %v1790_v6 = vmul.f32 %v1940_v22, %v1782_v21  ;;  %v1791_v59 = vmul.f32 %v1940_v22, %v1783_v23 }
 0x92b   :  { %v1798_v16 = vadd.f32 %v1941_v24, %v1790_v6  ;;  %v1799_v20 = vadd.f32 %v1941_v24, %v1791_v59 }
 0x92d   :  { %v1800_v25 = vmax.f32 %v1798_v16, 0.0  ;;  %v1801_v26 = vmax.f32 %v1799_v20, 0.0 }
 0x92f   :  { %v1802_v29 = vsel %vm1754_vm1, %v1800_v25, 0.0  ;;  %v1809_v30 = vsel %vm1754_vm1, %v1801_v26, 0.0 }
 0x930   :  { %v1803_v31 = vrot.slane %v1802_v29, 4  ;;  %v1810_v32 = vrot.slane %v1809_v30, 4 }
 0x932   :  { %v1804_v33 = vadd.f32 %v1803_v31, %v1802_v29  ;;  %v1811_v35 = vadd.f32 %v1810_v32, %v1809_v30 }
 0x934   :  { %v1805_v36 = vrot.slane %v1804_v33, 2  ;;  %v1812_v37 = vrot.slane %v1811_v35, 2 }
 0x936   :  { %v1806_v41 = vadd.f32 %v1805_v36, %v1804_v33  ;;  %v1813_v39 = vadd.f32 %v1812_v37, %v1811_v35 }
 0x938   :  { %v1807_v50 = vrot.slane %v1806_v41, 1  ;;  %v1814_v40 = vrot.slane %v1813_v39, 1 }
 0x93a   :  { %v1808_v42 = vadd.f32 %v1807_v50, %v1806_v41  ;;  %v1815_v43 = vadd.f32 %v1814_v40, %v1813_v39 }
 0x93c   :  { %v1817_v44 = vmul.f32 0.25, %v1808_v42  ;;  %v1818_v46 = vmul.f32 0.25, %v1815_v43 }
 0x93e   :  { %v1832_v27 = vsel %vm899_vm9, %v1818_v46, %v1817_v44 }
 0x93f   :  { %2059 = vmatmul.mubr.msk.f32.vlgmr.msra.gmra.mrb[16].mxu1 %vm448_vm12, %v1832_v27 }
 0xa12   :  { %v1901_v48 = vpop.f32.mrb[16].mxu1 }
 0xa13   :  { %v1902_v49 = vadd.f32 %v1942_v28, %v1901_v48  ;;  %v2060_v51 = vpop.f32.mrb[17].mxu1 }
 0xa15   :  { %1906 = vst.msk [vmem:[%s3268_s21] sm:$0x3] %vm1905_vm3, %v1902_v49 }

</bundles_post_ra>
